<compile_context>
chip_gen: v7x
topology: tpu7x:2x2x1
jax: 0.10.0
libtpu: 0.0.40
codegen_flags: <defaults>
</compile_context>

<pallas_src>
import functools
import math

import numpy as np

import jax
import jax.numpy as jnp
from jax import lax
from jax.experimental import pallas as pl
from jax.experimental.pallas import tpu as pltpu


# ----------------------------------------------------------------------------
# Pallas kernel 1: conv (gather folded in) + BN scale/shift + ReLU
#   x_ref : (R_in, K_lanes)        one batch element, channels-last, 2D
#   w_ref : (S * K_lanes, C_lanes) banded conv weights (host precomputed)
#   ss_ref: (2, C_lanes)           row 0 = scale, row 1 = shift (BN folded)
#   o_ref : (rows_out, C_lanes)    lane-dense conv output (ho-major, c-minor)
# ----------------------------------------------------------------------------
def _conv_band_kernel(x_ref, w_ref, ss_ref, o_ref, *, num_shifts, rows_out,
                      k_lanes):
    acc = jnp.dot(x_ref[0:rows_out, :], w_ref[0:k_lanes, :],
                  preferred_element_type=jnp.float32)
    for s in range(1, num_shifts):          # static, unrolled (9 or 4 steps)
        acc = acc + jnp.dot(x_ref[s:s + rows_out, :],
                            w_ref[s * k_lanes:(s + 1) * k_lanes, :],
                            preferred_element_type=jnp.float32)
    acc = acc * ss_ref[0:1, :] + ss_ref[1:2, :]
    o_ref[...] = jnp.maximum(acc, 0.0).astype(o_ref.dtype)


def _conv_band(x, band, scale_shift, rows_out):
    """x: (N, R_in, K_lanes) bf16; band: (S*K_lanes, C_lanes) bf16;
    scale_shift: (2, C_lanes) f32.  Returns (N, rows_out, C_lanes) bf16."""
    n, r_in, k_lanes = x.shape
    sk, c_lanes = band.shape
    num_shifts = sk // k_lanes
    kernel = functools.partial(_conv_band_kernel, num_shifts=num_shifts,
                               rows_out=rows_out, k_lanes=k_lanes)
    cost = pl.CostEstimate(
        flops=2 * n * num_shifts * rows_out * k_lanes * c_lanes,
        transcendentals=0,
        bytes_accessed=(x.size * 2 + band.size * 2 + scale_shift.size * 4
                        + n * rows_out * c_lanes * 2))
    return pl.pallas_call(
        kernel,
        out_shape=jax.ShapeDtypeStruct((n, rows_out, c_lanes), jnp.bfloat16),
        grid=(n,),
        in_specs=[
            pl.BlockSpec((None, r_in, k_lanes), lambda b: (b, 0, 0)),
            pl.BlockSpec((sk, c_lanes), lambda b: (0, 0)),
            pl.BlockSpec((2, c_lanes), lambda b: (0, 0)),
        ],
        out_specs=pl.BlockSpec((None, rows_out, c_lanes), lambda b: (b, 0, 0)),
        compiler_params=pltpu.CompilerParams(
            dimension_semantics=("parallel",)),
        cost_estimate=cost,
    )(x, band, scale_shift)


# ----------------------------------------------------------------------------
# Pallas kernel 2: fused fc1(+ReLU)(+fc2) head (single VMEM block)
# ----------------------------------------------------------------------------
def _head_logits_kernel(x_ref, w1_ref, b1_ref, w2_ref, b2_ref, o_ref):
    h = jnp.maximum(jnp.dot(x_ref[...], w1_ref[...],
                            preferred_element_type=jnp.float32) + b1_ref[...],
                    0.0)
    o_ref[...] = (jnp.dot(h.astype(w2_ref.dtype), w2_ref[...],
                          preferred_element_type=jnp.float32) + b2_ref[...])


def _head_features_kernel(x_ref, w1_ref, b1_ref, o_ref):
    o_ref[...] = jnp.maximum(
        jnp.dot(x_ref[...], w1_ref[...],
                preferred_element_type=jnp.float32) + b1_ref[...], 0.0)


def _fused_head(x, w1, b1, w2, b2, feature_extraction):
    b, k = x.shape
    hdim = w1.shape[1]
    xb = x.astype(jnp.bfloat16)
    b1r = b1.reshape(1, hdim)
    if feature_extraction:
        cost = pl.CostEstimate(
            flops=2 * b * k * hdim, transcendentals=0,
            bytes_accessed=(b * k + k * hdim) * 2 + (hdim + b * hdim) * 4)
        return pl.pallas_call(
            _head_features_kernel,
            out_shape=jax.ShapeDtypeStruct((b, hdim), jnp.float32),
            cost_estimate=cost,
        )(xb, w1, b1r)
    c = w2.shape[1]
    cost = pl.CostEstimate(
        flops=2 * b * k * hdim + 2 * b * hdim * c, transcendentals=0,
        bytes_accessed=(b * k + k * hdim + hdim * c) * 2
                       + (hdim + c + b * c) * 4)
    return pl.pallas_call(
        _head_logits_kernel,
        out_shape=jax.ShapeDtypeStruct((b, c), jnp.float32),
        cost_estimate=cost,
    )(xb, w1, b1r, w2, b2.reshape(1, c))


# ----------------------------------------------------------------------------
# Host-side (one time) weight transforms: banded conv weights + BN folding
# ----------------------------------------------------------------------------
def _build_conv1_band(w, H, W, Ho):
    """Conv3d weight (Cout, 1, KD, KH, KW) -> band of shape (KD*H*W, Ho*Cout)
    so that out2d[do, ho*Cout + co] = sum_kd x2d[do+kd, :] @ band[kd]."""
    Cout, Cin, KD, KH, KW = w.shape
    assert Cin == 1
    A = np.zeros((KD, H * W, Ho * Cout), np.float32)
    for kd in range(KD):
        for kh in range(KH):
            for kw in range(KW):
                col = w[:, 0, kd, kh, kw]                       # (Cout,)
                for ho in range(Ho):
                    A[kd, (ho + kh) * W + kw,
                      ho * Cout:(ho + 1) * Cout] = col
    return A.reshape(KD * H * W, Ho * Cout)


def _build_conv2_band(w, Hp, Wout):
    """Conv2d weight (Cout, Cin, KH, KW) over a channels-last (Dp, Hp, Cin)
    slab flattened to (Dp, Hp*Cin) -> band of shape (KH*Hp*Cin, Wout*Cout)."""
    Cout, Cin, KH, KW = w.shape
    A = np.zeros((KH, Hp * Cin, Wout * Cout), np.float32)
    for kh in range(KH):
        for kw in range(KW):
            blk = w[:, :, kh, kw].T                             # (Cin, Cout)
            for b in range(Wout):
                hp = b + kw
                A[kh, hp * Cin:(hp + 1) * Cin,
                  b * Cout:(b + 1) * Cout] = blk
    return A.reshape(KH * Hp * Cin, Wout * Cout)


def _bn_fold(gamma, beta, mean, var, conv_bias, eps=1e-5):
    # BN(conv + bias) == conv * s + t   (eval mode)
    s = gamma / jnp.sqrt(var + eps)
    t = (conv_bias - mean) * s + beta
    return s, t


def _maxpool2x2_cl(x):
    # (N, H, W, C), kernel 2, stride 2, floor mode (matches F.max_pool2d)
    n, h, w, c = x.shape
    ho, wo = h // 2, w // 2
    return x[:, :ho * 2, :wo * 2, :].reshape(n, ho, 2, wo, 2, c).max(axis=(2, 4))


def _maxpool2x2_nchw(x):
    n, c, h, w = x.shape
    ho, wo = h // 2, w // 2
    return x[:, :, :ho * 2, :wo * 2].reshape(n, c, ho, 2, wo, 2).max(axis=(3, 5))


# ----------------------------------------------------------------------------
# Model: parameter init (PyTorch layout), forward builder, pure-JAX reference
# ----------------------------------------------------------------------------
def init_params(key, num_classes, hidden, flat_dim):
    ks = jax.random.split(key, 8)
    p = {}
    # Conv3d(1, 32, (9,3,2)): n = k0*k1*out_ch = 9*3*32
    p["conv1_w"] = jax.random.normal(ks[0], (32, 1, 9, 3, 2), jnp.float32) * \
        math.sqrt(2.0 / (9 * 3 * 32))
    p["conv1_b"] = jnp.zeros((32,), jnp.float32)
    # Conv2d(32, 64, 4): n = 4*4*64
    p["conv2_w"] = jax.random.normal(ks[1], (64, 32, 4, 4), jnp.float32) * \
        math.sqrt(2.0 / (4 * 4 * 64))
    p["conv2_b"] = jnp.zeros((64,), jnp.float32)
    # BatchNorm eval-mode parameters (randomized stand-ins for trained stats
    # so the folded scale/shift path is actually exercised).
    for i, (name, c) in enumerate((("bn1", 32), ("bn2", 64))):
        kk = jax.random.split(ks[2 + i], 4)
        p[name + "_g"] = 1.0 + 0.1 * jax.random.normal(kk[0], (c,), jnp.float32)
        p[name + "_b"] = 0.1 * jax.random.normal(kk[1], (c,), jnp.float32)
        p[name + "_m"] = 0.1 * jax.random.normal(kk[2], (c,), jnp.float32)
        p[name + "_v"] = 1.0 + 0.1 * jax.random.uniform(kk[3], (c,), jnp.float32)
    # Linear layers: N(0, 0.01), zero bias (PyTorch _initialize_weights).
    p["fc1_w"] = 0.01 * jax.random.normal(ks[4], (hidden, flat_dim), jnp.float32)
    p["fc1_b"] = jnp.zeros((hidden,), jnp.float32)
    p["fc2_w"] = 0.01 * jax.random.normal(ks[5], (num_classes, hidden), jnp.float32)
    p["fc2_b"] = jnp.zeros((num_classes,), jnp.float32)
    return p


def build_forward(params, input_shape):
    """Fold BN, build banded conv weights, permute fc weights into the
    channels-last flatten order (all host-side, once).  Returns (folded
    arrays, forward fn closed over the static geometry)."""
    _, cin, D, H, W = input_shape
    C1, _, KD, KH, KW = params["conv1_w"].shape
    C2, _, K2h, K2w = params["conv2_w"].shape
    Do, Ho, Wo = D - KD + 1, H - KH + 1, W - KW + 1
    assert cin == 1 and Wo == 1, "DeepSpikeSort expects NCDHW input with W == 2"
    Dp, Hp = Do // 2, Ho // 2
    H2, W2 = Dp - K2h + 1, Hp - K2w + 1
    Hf, Wf = H2 // 2, W2 // 2
    hidden = params["fc1_w"].shape[0]
    assert params["fc1_w"].shape[1] == C2 * Hf * Wf

    s1, t1 = _bn_fold(params["bn1_g"], params["bn1_b"], params["bn1_m"],
                      params["bn1_v"], params["conv1_b"])
    s2, t2 = _bn_fold(params["bn2_g"], params["bn2_b"], params["bn2_m"],
                      params["bn2_v"], params["conv2_b"])

    folded = {
        "band1": jnp.asarray(_build_conv1_band(
            np.asarray(params["conv1_w"]), H, W, Ho)).astype(jnp.bfloat16),
        "ss1": jnp.stack([jnp.tile(s1, Ho), jnp.tile(t1, Ho)]).astype(jnp.float32),
        "band2": jnp.asarray(_build_conv2_band(
            np.asarray(params["conv2_w"]), Hp, W2)).astype(jnp.bfloat16),
        "ss2": jnp.stack([jnp.tile(s2, W2), jnp.tile(t2, W2)]).astype(jnp.float32),
        # fc1 columns permuted once from PyTorch's (C, Hf, Wf) flatten to our
        # channels-last (Hf, Wf, C) flatten (weights only).
        "fc1_w": params["fc1_w"].reshape(hidden, C2, Hf, Wf)
                 .transpose(0, 2, 3, 1).reshape(hidden, Hf * Wf * C2)
                 .T.astype(jnp.bfloat16),
        "fc1_b": params["fc1_b"].astype(jnp.float32),
        "fc2_w": params["fc2_w"].T.astype(jnp.bfloat16),
        "fc2_b": params["fc2_b"].astype(jnp.float32),
    }

    def forward(x, f, feature_extraction=False):
        n = x.shape[0]
        # NCDHW -> channels-last; (H, W, C=1) flattened onto the lane axis.
        x2 = jnp.transpose(x, (0, 2, 3, 4, 1)).reshape(n, D, H * W) \
                .astype(jnp.bfloat16)
        # conv1 + bn1 + relu (patch gather folded into the kernel).
        y = _conv_band(x2, f["band1"], f["ss1"], rows_out=Do)   # (n, Do, Ho*C1)
        # torch.squeeze(x, 4) is implicit (Wo == 1); then max_pool2d(2).
        y = _maxpool2x2_cl(y.reshape(n, Do, Ho, C1))             # (n, Dp, Hp, C1)
        # conv2 + bn2 + relu (gather folded in) + max_pool2d(2).
        y = _conv_band(y.reshape(n, Dp, Hp * C1), f["band2"], f["ss2"],
                       rows_out=H2)                              # (n, H2, W2*C2)
        y = _maxpool2x2_cl(y.reshape(n, H2, W2, C2))             # (n, Hf, Wf, C2)
        # drop2 / dropout: eval mode -> identity.
        y = y.reshape(n, Hf * Wf * C2)
        return _fused_head(y, f["fc1_w"], f["fc1_b"], f["fc2_w"], f["fc2_b"],
                           feature_extraction)

    return folded, forward


def reference_forward(x, p, feature_extraction=False):
    """Pure-JAX (XLA) mirror of the PyTorch forward, eval mode, f32."""
    eps = 1e-5
    y = lax.conv_general_dilated(x, p["conv1_w"], (1, 1, 1), "VALID",
                                 dimension_numbers=("NCDHW", "OIDHW", "NCDHW"))
    y = y + p["conv1_b"].reshape(1, -1, 1, 1, 1)
    y = (y - p["bn1_m"].reshape(1, -1, 1, 1, 1)) \
        / jnp.sqrt(p["bn1_v"].reshape(1, -1, 1, 1, 1) + eps)
    y = y * p["bn1_g"].reshape(1, -1, 1, 1, 1) + p["bn1_b"].reshape(1, -1, 1, 1, 1)
    y = jnp.maximum(y, 0.0)
    y = jnp.squeeze(y, axis=4)
    y = _maxpool2x2_nchw(y)
    y = lax.conv_general_dilated(y, p["conv2_w"], (1, 1), "VALID",
                                 dimension_numbers=("NCHW", "OIHW", "NCHW"))
    y = y + p["conv2_b"].reshape(1, -1, 1, 1)
    y = (y - p["bn2_m"].reshape(1, -1, 1, 1)) \
        / jnp.sqrt(p["bn2_v"].reshape(1, -1, 1, 1) + eps)
    y = y * p["bn2_g"].reshape(1, -1, 1, 1) + p["bn2_b"].reshape(1, -1, 1, 1)
    y = jnp.maximum(y, 0.0)
    y = _maxpool2x2_nchw(y)
    y = y.reshape(y.shape[0], -1)                 # PyTorch (C, H, W) flatten
    h = jnp.maximum(y @ p["fc1_w"].T + p["fc1_b"], 0.0)
    if feature_extraction:
        return h
    return h @ p["fc2_w"].T + p["fc2_b"]


# ----------------------------------------------------------------------------
if __name__ == "__main__":
    num_classes = 5
    hidden = 64                       # shrunk stand-in for the original 5000
    batch, D, H, W = 2, 32, 16, 2     # W=2 so conv1's W-dim squeezes to 1

    # Geometry implied by the forward pass.
    Do, Ho = D - 8, H - 2
    Dp, Hp = Do // 2, Ho // 2
    H2, W2 = Dp - 3, Hp - 3
    Hf, Wf = H2 // 2, W2 // 2
    flat_dim = 64 * Hf * Wf

    key = jax.random.PRNGKey(0)
    kx, kp = jax.random.split(key)
    params = init_params(kp, num_classes, hidden, flat_dim)
    x = jax.random.normal(kx, (batch, 1, D, H, W), jnp.float32)

    folded, forward = build_forward(params, (batch, 1, D, H, W))

    logits_fn = jax.jit(lambda xx: forward(xx, folded, feature_extraction=False))
    feats_fn = jax.jit(lambda xx: forward(xx, folded, feature_extraction=True))

    logits = jax.block_until_ready(logits_fn(x))
    feats = jax.block_until_ready(feats_fn(x))
    assert logits.shape == (batch, num_classes), logits.shape
    assert feats.shape == (batch, hidden), feats.shape
    assert bool(jnp.all(jnp.isfinite(logits)))

    # Correctness vs. a pure-JAX mirror of the PyTorch module (bf16 kernels
    # vs f32 reference -> loose tolerance).
    ref_logits = np.asarray(reference_forward(x, params))
    ref_feats = np.asarray(reference_forward(x, params, feature_extraction=True))
    np.testing.assert_allclose(np.asarray(logits), ref_logits, atol=2e-2, rtol=2e-2)
    np.testing.assert_allclose(np.asarray(feats), ref_feats, atol=2e-2, rtol=2e-2)

    print("KERNEL_OK")
</pallas_src>

<mosaic_0001>
module attributes {stable_mosaic.version = 11 : i64} {
  func.func @_conv_band_kernel(%arg0: i32, %arg1: memref<1x32x32xbf16, #tpu.memory_space<vmem>>, %arg2: memref<288x448xbf16, #tpu.memory_space<vmem>>, %arg3: memref<2x448xf32, #tpu.memory_space<vmem>>, %arg4: memref<1x24x448xbf16, #tpu.memory_space<vmem>>) attributes {dimension_semantics = [#tpu.dimension_semantics<parallel>], iteration_bounds = array<i64: 2>, scalar_prefetch = 0 : i64, scratch_operands = 0 : i64, tpu.core_type = #tpu.core_type<tc>, window_params = [{transform_indices = @transform_0, window_bounds = array<i64: 1, 32, 32>}, {pipeline_mode = #tpu.pipeline_mode<synchronous>, transform_indices = @transform_1, window_bounds = array<i64: 288, 448>}, {pipeline_mode = #tpu.pipeline_mode<synchronous>, transform_indices = @transform_2, window_bounds = array<i64: 2, 448>}, {transform_indices = @transform_3, window_bounds = array<i64: 1, 24, 448>}]} {
    %c0 = arith.constant 0 : index
    %c0_0 = arith.constant 0 : index
    %c0_1 = arith.constant 0 : index
    %0 = vector.load %arg1[%c0, %c0_0, %c0_1] : memref<1x32x32xbf16, #tpu.memory_space<vmem>>, vector<1x24x32xbf16>
    %1 = vector.shape_cast %0 : vector<1x24x32xbf16> to vector<24x32xbf16>
    %c0_2 = arith.constant 0 : index
    %c0_3 = arith.constant 0 : index
    %2 = vector.load %arg2[%c0_2, %c0_3] : memref<288x448xbf16, #tpu.memory_space<vmem>>, vector<32x448xbf16>
    %cst = arith.constant dense<0.000000e+00> : vector<24x448xf32>
    %3 = tpu.matmul %1, %2, %cst {dimension_numbers = #tpu.dot_dimension_numbers<[1], [0], [0], [1], [0, 0, 1, 1], [], []>} : vector<24x32xbf16>, vector<32x448xbf16>, vector<24x448xf32> -> vector<24x448xf32>
    %c0_4 = arith.constant 0 : index
    %c1 = arith.constant 1 : index
    %c0_5 = arith.constant 0 : index
    %4 = vector.load %arg1[%c0_4, %c1, %c0_5] : memref<1x32x32xbf16, #tpu.memory_space<vmem>>, vector<1x24x32xbf16>
    %5 = vector.shape_cast %4 : vector<1x24x32xbf16> to vector<24x32xbf16>
    %c32 = arith.constant 32 : index
    %c0_6 = arith.constant 0 : index
    %6 = vector.load %arg2[%c32, %c0_6] : memref<288x448xbf16, #tpu.memory_space<vmem>>, vector<32x448xbf16>
    %cst_7 = arith.constant dense<0.000000e+00> : vector<24x448xf32>
    %7 = tpu.matmul %5, %6, %cst_7 {dimension_numbers = #tpu.dot_dimension_numbers<[1], [0], [0], [1], [0, 0, 1, 1], [], []>} : vector<24x32xbf16>, vector<32x448xbf16>, vector<24x448xf32> -> vector<24x448xf32>
    %8 = arith.addf %3, %7 : vector<24x448xf32>
    %c0_8 = arith.constant 0 : index
    %c2 = arith.constant 2 : index
    %c0_9 = arith.constant 0 : index
    %9 = vector.load %arg1[%c0_8, %c2, %c0_9] : memref<1x32x32xbf16, #tpu.memory_space<vmem>>, vector<1x24x32xbf16>
    %10 = vector.shape_cast %9 : vector<1x24x32xbf16> to vector<24x32xbf16>
    %c64 = arith.constant 64 : index
    %c0_10 = arith.constant 0 : index
    %11 = vector.load %arg2[%c64, %c0_10] : memref<288x448xbf16, #tpu.memory_space<vmem>>, vector<32x448xbf16>
    %cst_11 = arith.constant dense<0.000000e+00> : vector<24x448xf32>
    %12 = tpu.matmul %10, %11, %cst_11 {dimension_numbers = #tpu.dot_dimension_numbers<[1], [0], [0], [1], [0, 0, 1, 1], [], []>} : vector<24x32xbf16>, vector<32x448xbf16>, vector<24x448xf32> -> vector<24x448xf32>
    %13 = arith.addf %8, %12 : vector<24x448xf32>
    %c0_12 = arith.constant 0 : index
    %c3 = arith.constant 3 : index
    %c0_13 = arith.constant 0 : index
    %14 = vector.load %arg1[%c0_12, %c3, %c0_13] : memref<1x32x32xbf16, #tpu.memory_space<vmem>>, vector<1x24x32xbf16>
    %15 = vector.shape_cast %14 : vector<1x24x32xbf16> to vector<24x32xbf16>
    %c96 = arith.constant 96 : index
    %c0_14 = arith.constant 0 : index
    %16 = vector.load %arg2[%c96, %c0_14] : memref<288x448xbf16, #tpu.memory_space<vmem>>, vector<32x448xbf16>
    %cst_15 = arith.constant dense<0.000000e+00> : vector<24x448xf32>
    %17 = tpu.matmul %15, %16, %cst_15 {dimension_numbers = #tpu.dot_dimension_numbers<[1], [0], [0], [1], [0, 0, 1, 1], [], []>} : vector<24x32xbf16>, vector<32x448xbf16>, vector<24x448xf32> -> vector<24x448xf32>
    %18 = arith.addf %13, %17 : vector<24x448xf32>
    %c0_16 = arith.constant 0 : index
    %c4 = arith.constant 4 : index
    %c0_17 = arith.constant 0 : index
    %19 = vector.load %arg1[%c0_16, %c4, %c0_17] : memref<1x32x32xbf16, #tpu.memory_space<vmem>>, vector<1x24x32xbf16>
    %20 = vector.shape_cast %19 : vector<1x24x32xbf16> to vector<24x32xbf16>
    %c128 = arith.constant 128 : index
    %c0_18 = arith.constant 0 : index
    %21 = vector.load %arg2[%c128, %c0_18] : memref<288x448xbf16, #tpu.memory_space<vmem>>, vector<32x448xbf16>
    %cst_19 = arith.constant dense<0.000000e+00> : vector<24x448xf32>
    %22 = tpu.matmul %20, %21, %cst_19 {dimension_numbers = #tpu.dot_dimension_numbers<[1], [0], [0], [1], [0, 0, 1, 1], [], []>} : vector<24x32xbf16>, vector<32x448xbf16>, vector<24x448xf32> -> vector<24x448xf32>
    %23 = arith.addf %18, %22 : vector<24x448xf32>
    %c0_20 = arith.constant 0 : index
    %c5 = arith.constant 5 : index
    %c0_21 = arith.constant 0 : index
    %24 = vector.load %arg1[%c0_20, %c5, %c0_21] : memref<1x32x32xbf16, #tpu.memory_space<vmem>>, vector<1x24x32xbf16>
    %25 = vector.shape_cast %24 : vector<1x24x32xbf16> to vector<24x32xbf16>
    %c160 = arith.constant 160 : index
    %c0_22 = arith.constant 0 : index
    %26 = vector.load %arg2[%c160, %c0_22] : memref<288x448xbf16, #tpu.memory_space<vmem>>, vector<32x448xbf16>
    %cst_23 = arith.constant dense<0.000000e+00> : vector<24x448xf32>
    %27 = tpu.matmul %25, %26, %cst_23 {dimension_numbers = #tpu.dot_dimension_numbers<[1], [0], [0], [1], [0, 0, 1, 1], [], []>} : vector<24x32xbf16>, vector<32x448xbf16>, vector<24x448xf32> -> vector<24x448xf32>
    %28 = arith.addf %23, %27 : vector<24x448xf32>
    %c0_24 = arith.constant 0 : index
    %c6 = arith.constant 6 : index
    %c0_25 = arith.constant 0 : index
    %29 = vector.load %arg1[%c0_24, %c6, %c0_25] : memref<1x32x32xbf16, #tpu.memory_space<vmem>>, vector<1x24x32xbf16>
    %30 = vector.shape_cast %29 : vector<1x24x32xbf16> to vector<24x32xbf16>
    %c192 = arith.constant 192 : index
    %c0_26 = arith.constant 0 : index
    %31 = vector.load %arg2[%c192, %c0_26] : memref<288x448xbf16, #tpu.memory_space<vmem>>, vector<32x448xbf16>
    %cst_27 = arith.constant dense<0.000000e+00> : vector<24x448xf32>
    %32 = tpu.matmul %30, %31, %cst_27 {dimension_numbers = #tpu.dot_dimension_numbers<[1], [0], [0], [1], [0, 0, 1, 1], [], []>} : vector<24x32xbf16>, vector<32x448xbf16>, vector<24x448xf32> -> vector<24x448xf32>
    %33 = arith.addf %28, %32 : vector<24x448xf32>
    %c0_28 = arith.constant 0 : index
    %c7 = arith.constant 7 : index
    %c0_29 = arith.constant 0 : index
    %34 = vector.load %arg1[%c0_28, %c7, %c0_29] : memref<1x32x32xbf16, #tpu.memory_space<vmem>>, vector<1x24x32xbf16>
    %35 = vector.shape_cast %34 : vector<1x24x32xbf16> to vector<24x32xbf16>
    %c224 = arith.constant 224 : index
    %c0_30 = arith.constant 0 : index
    %36 = vector.load %arg2[%c224, %c0_30] : memref<288x448xbf16, #tpu.memory_space<vmem>>, vector<32x448xbf16>
    %cst_31 = arith.constant dense<0.000000e+00> : vector<24x448xf32>
    %37 = tpu.matmul %35, %36, %cst_31 {dimension_numbers = #tpu.dot_dimension_numbers<[1], [0], [0], [1], [0, 0, 1, 1], [], []>} : vector<24x32xbf16>, vector<32x448xbf16>, vector<24x448xf32> -> vector<24x448xf32>
    %38 = arith.addf %33, %37 : vector<24x448xf32>
    %c0_32 = arith.constant 0 : index
    %c8 = arith.constant 8 : index
    %c0_33 = arith.constant 0 : index
    %39 = vector.load %arg1[%c0_32, %c8, %c0_33] : memref<1x32x32xbf16, #tpu.memory_space<vmem>>, vector<1x24x32xbf16>
    %40 = vector.shape_cast %39 : vector<1x24x32xbf16> to vector<24x32xbf16>
    %c256 = arith.constant 256 : index
    %c0_34 = arith.constant 0 : index
    %41 = vector.load %arg2[%c256, %c0_34] : memref<288x448xbf16, #tpu.memory_space<vmem>>, vector<32x448xbf16>
    %cst_35 = arith.constant dense<0.000000e+00> : vector<24x448xf32>
    %42 = tpu.matmul %40, %41, %cst_35 {dimension_numbers = #tpu.dot_dimension_numbers<[1], [0], [0], [1], [0, 0, 1, 1], [], []>} : vector<24x32xbf16>, vector<32x448xbf16>, vector<24x448xf32> -> vector<24x448xf32>
    %43 = arith.addf %38, %42 : vector<24x448xf32>
    %c0_36 = arith.constant 0 : index
    %c0_37 = arith.constant 0 : index
    %44 = vector.load %arg3[%c0_36, %c0_37] : memref<2x448xf32, #tpu.memory_space<vmem>>, vector<1x448xf32>
    %45 = vector.broadcast %44 : vector<1x448xf32> to vector<24x448xf32>
    %46 = arith.mulf %43, %45 : vector<24x448xf32>
    %c1_38 = arith.constant 1 : index
    %c0_39 = arith.constant 0 : index
    %47 = vector.load %arg3[%c1_38, %c0_39] : memref<2x448xf32, #tpu.memory_space<vmem>>, vector<1x448xf32>
    %48 = vector.broadcast %47 : vector<1x448xf32> to vector<24x448xf32>
    %49 = arith.addf %46, %48 : vector<24x448xf32>
    %cst_40 = arith.constant 0.000000e+00 : f32
    %50 = vector.broadcast %cst_40 : f32 to vector<24x448xf32>
    %51 = arith.maximumf %49, %50 : vector<24x448xf32>
    %52 = arith.truncf %51 : vector<24x448xf32> to vector<24x448xbf16>
    %c0_41 = arith.constant 0 : index
    %c0_42 = arith.constant 0 : index
    %c0_43 = arith.constant 0 : index
    %53 = vector.load %arg4[%c0_41, %c0_42, %c0_43] : memref<1x24x448xbf16, #tpu.memory_space<vmem>>, vector<1x24x448xbf16>
    %54 = vector.shape_cast %53 : vector<1x24x448xbf16> to vector<24x448xbf16>
    %55 = vector.shape_cast %52 : vector<24x448xbf16> to vector<1x24x448xbf16>
    tpu.vector_store %arg4[%c0_41, %c0_42, %c0_43], %55 {strides = array<i32>} : memref<1x24x448xbf16, #tpu.memory_space<vmem>>, vector<1x24x448xbf16>,
    return
  }
  func.func @transform_0(%arg0: i32) -> (i32, i32, i32) {
    %c0_i32 = arith.constant 0 : i32
    %c0_i32_0 = arith.constant 0 : i32
    %c0_i32_1 = arith.constant 0 : i32
    return %arg0, %c0_i32, %c0_i32_0 : i32, i32, i32
  }
  func.func @transform_1(%arg0: i32) -> (i32, i32) {
    %c0_i32 = arith.constant 0 : i32
    %c0_i32_0 = arith.constant 0 : i32
    %c0_i32_1 = arith.constant 0 : i32
    return %c0_i32, %c0_i32_0 : i32, i32
  }
  func.func @transform_2(%arg0: i32) -> (i32, i32) {
    %c0_i32 = arith.constant 0 : i32
    %c0_i32_0 = arith.constant 0 : i32
    %c0_i32_1 = arith.constant 0 : i32
    return %c0_i32, %c0_i32_0 : i32, i32
  }
  func.func @transform_3(%arg0: i32) -> (i32, i32, i32) {
    %c0_i32 = arith.constant 0 : i32
    %c0_i32_0 = arith.constant 0 : i32
    %c0_i32_1 = arith.constant 0 : i32
    return %arg0, %c0_i32, %c0_i32_0 : i32, i32, i32
  }
}

module attributes {stable_mosaic.version = 11 : i64} {
  func.func @_conv_band_kernel(%arg0: i32, %arg1: memref<1x12x224xbf16, #tpu.memory_space<vmem>>, %arg2: memref<896x256xbf16, #tpu.memory_space<vmem>>, %arg3: memref<2x256xf32, #tpu.memory_space<vmem>>, %arg4: memref<1x9x256xbf16, #tpu.memory_space<vmem>>) attributes {dimension_semantics = [#tpu.dimension_semantics<parallel>], iteration_bounds = array<i64: 2>, scalar_prefetch = 0 : i64, scratch_operands = 0 : i64, tpu.core_type = #tpu.core_type<tc>, window_params = [{transform_indices = @transform_0, window_bounds = array<i64: 1, 12, 224>}, {pipeline_mode = #tpu.pipeline_mode<synchronous>, transform_indices = @transform_1, window_bounds = array<i64: 896, 256>}, {pipeline_mode = #tpu.pipeline_mode<synchronous>, transform_indices = @transform_2, window_bounds = array<i64: 2, 256>}, {transform_indices = @transform_3, window_bounds = array<i64: 1, 9, 256>}]} {
    %c0 = arith.constant 0 : index
    %c0_0 = arith.constant 0 : index
    %c0_1 = arith.constant 0 : index
    %0 = vector.load %arg1[%c0, %c0_0, %c0_1] : memref<1x12x224xbf16, #tpu.memory_space<vmem>>, vector<1x9x224xbf16>
    %1 = vector.shape_cast %0 : vector<1x9x224xbf16> to vector<9x224xbf16>
    %c0_2 = arith.constant 0 : index
    %c0_3 = arith.constant 0 : index
    %2 = vector.load %arg2[%c0_2, %c0_3] : memref<896x256xbf16, #tpu.memory_space<vmem>>, vector<224x256xbf16>
    %cst = arith.constant dense<0.000000e+00> : vector<9x256xf32>
    %3 = tpu.matmul %1, %2, %cst {dimension_numbers = #tpu.dot_dimension_numbers<[1], [0], [0], [1], [0, 0, 1, 1], [], []>} : vector<9x224xbf16>, vector<224x256xbf16>, vector<9x256xf32> -> vector<9x256xf32>
    %c0_4 = arith.constant 0 : index
    %c1 = arith.constant 1 : index
    %c0_5 = arith.constant 0 : index
    %4 = vector.load %arg1[%c0_4, %c1, %c0_5] : memref<1x12x224xbf16, #tpu.memory_space<vmem>>, vector<1x9x224xbf16>
    %5 = vector.shape_cast %4 : vector<1x9x224xbf16> to vector<9x224xbf16>
    %c224 = arith.constant 224 : index
    %c0_6 = arith.constant 0 : index
    %6 = vector.load %arg2[%c224, %c0_6] : memref<896x256xbf16, #tpu.memory_space<vmem>>, vector<224x256xbf16>
    %cst_7 = arith.constant dense<0.000000e+00> : vector<9x256xf32>
    %7 = tpu.matmul %5, %6, %cst_7 {dimension_numbers = #tpu.dot_dimension_numbers<[1], [0], [0], [1], [0, 0, 1, 1], [], []>} : vector<9x224xbf16>, vector<224x256xbf16>, vector<9x256xf32> -> vector<9x256xf32>
    %8 = arith.addf %3, %7 : vector<9x256xf32>
    %c0_8 = arith.constant 0 : index
    %c2 = arith.constant 2 : index
    %c0_9 = arith.constant 0 : index
    %9 = vector.load %arg1[%c0_8, %c2, %c0_9] : memref<1x12x224xbf16, #tpu.memory_space<vmem>>, vector<1x9x224xbf16>
    %10 = vector.shape_cast %9 : vector<1x9x224xbf16> to vector<9x224xbf16>
    %c448 = arith.constant 448 : index
    %c0_10 = arith.constant 0 : index
    %11 = vector.load %arg2[%c448, %c0_10] : memref<896x256xbf16, #tpu.memory_space<vmem>>, vector<224x256xbf16>
    %cst_11 = arith.constant dense<0.000000e+00> : vector<9x256xf32>
    %12 = tpu.matmul %10, %11, %cst_11 {dimension_numbers = #tpu.dot_dimension_numbers<[1], [0], [0], [1], [0, 0, 1, 1], [], []>} : vector<9x224xbf16>, vector<224x256xbf16>, vector<9x256xf32> -> vector<9x256xf32>
    %13 = arith.addf %8, %12 : vector<9x256xf32>
    %c0_12 = arith.constant 0 : index
    %c3 = arith.constant 3 : index
    %c0_13 = arith.constant 0 : index
    %14 = vector.load %arg1[%c0_12, %c3, %c0_13] : memref<1x12x224xbf16, #tpu.memory_space<vmem>>, vector<1x9x224xbf16>
    %15 = vector.shape_cast %14 : vector<1x9x224xbf16> to vector<9x224xbf16>
    %c672 = arith.constant 672 : index
    %c0_14 = arith.constant 0 : index
    %16 = vector.load %arg2[%c672, %c0_14] : memref<896x256xbf16, #tpu.memory_space<vmem>>, vector<224x256xbf16>
    %cst_15 = arith.constant dense<0.000000e+00> : vector<9x256xf32>
    %17 = tpu.matmul %15, %16, %cst_15 {dimension_numbers = #tpu.dot_dimension_numbers<[1], [0], [0], [1], [0, 0, 1, 1], [], []>} : vector<9x224xbf16>, vector<224x256xbf16>, vector<9x256xf32> -> vector<9x256xf32>
    %18 = arith.addf %13, %17 : vector<9x256xf32>
    %c0_16 = arith.constant 0 : index
    %c0_17 = arith.constant 0 : index
    %19 = vector.load %arg3[%c0_16, %c0_17] : memref<2x256xf32, #tpu.memory_space<vmem>>, vector<1x256xf32>
    %20 = vector.broadcast %19 : vector<1x256xf32> to vector<9x256xf32>
    %21 = arith.mulf %18, %20 : vector<9x256xf32>
    %c1_18 = arith.constant 1 : index
    %c0_19 = arith.constant 0 : index
    %22 = vector.load %arg3[%c1_18, %c0_19] : memref<2x256xf32, #tpu.memory_space<vmem>>, vector<1x256xf32>
    %23 = vector.broadcast %22 : vector<1x256xf32> to vector<9x256xf32>
    %24 = arith.addf %21, %23 : vector<9x256xf32>
    %cst_20 = arith.constant 0.000000e+00 : f32
    %25 = vector.broadcast %cst_20 : f32 to vector<9x256xf32>
    %26 = arith.maximumf %24, %25 : vector<9x256xf32>
    %27 = arith.truncf %26 : vector<9x256xf32> to vector<9x256xbf16>
    %c0_21 = arith.constant 0 : index
    %c0_22 = arith.constant 0 : index
    %c0_23 = arith.constant 0 : index
    %28 = vector.load %arg4[%c0_21, %c0_22, %c0_23] : memref<1x9x256xbf16, #tpu.memory_space<vmem>>, vector<1x9x256xbf16>
    %29 = vector.shape_cast %28 : vector<1x9x256xbf16> to vector<9x256xbf16>
    %30 = vector.shape_cast %27 : vector<9x256xbf16> to vector<1x9x256xbf16>
    tpu.vector_store %arg4[%c0_21, %c0_22, %c0_23], %30 {strides = array<i32>} : memref<1x9x256xbf16, #tpu.memory_space<vmem>>, vector<1x9x256xbf16>,
    return
  }
  func.func @transform_0(%arg0: i32) -> (i32, i32, i32) {
    %c0_i32 = arith.constant 0 : i32
    %c0_i32_0 = arith.constant 0 : i32
    %c0_i32_1 = arith.constant 0 : i32
    return %arg0, %c0_i32, %c0_i32_0 : i32, i32, i32
  }
  func.func @transform_1(%arg0: i32) -> (i32, i32) {
    %c0_i32 = arith.constant 0 : i32
    %c0_i32_0 = arith.constant 0 : i32
    %c0_i32_1 = arith.constant 0 : i32
    return %c0_i32, %c0_i32_0 : i32, i32
  }
  func.func @transform_2(%arg0: i32) -> (i32, i32) {
    %c0_i32 = arith.constant 0 : i32
    %c0_i32_0 = arith.constant 0 : i32
    %c0_i32_1 = arith.constant 0 : i32
    return %c0_i32, %c0_i32_0 : i32, i32
  }
  func.func @transform_3(%arg0: i32) -> (i32, i32, i32) {
    %c0_i32 = arith.constant 0 : i32
    %c0_i32_0 = arith.constant 0 : i32
    %c0_i32_1 = arith.constant 0 : i32
    return %arg0, %c0_i32, %c0_i32_0 : i32, i32, i32
  }
}

module attributes {stable_mosaic.version = 11 : i64} {
  func.func @_head_logits_kernel(%arg0: memref<2x512xbf16, #tpu.memory_space<vmem>>, %arg1: memref<512x64xbf16, #tpu.memory_space<vmem>>, %arg2: memref<1x64xf32, #tpu.memory_space<vmem>>, %arg3: memref<64x5xbf16, #tpu.memory_space<vmem>>, %arg4: memref<1x5xf32, #tpu.memory_space<vmem>>, %arg5: memref<2x5xf32, #tpu.memory_space<vmem>>) attributes {dimension_semantics = [], scalar_prefetch = 0 : i64, scratch_operands = 0 : i64, tpu.core_type = #tpu.core_type<tc>} {
    %c0 = arith.constant 0 : index
    %c0_0 = arith.constant 0 : index
    %0 = vector.load %arg0[%c0, %c0_0] : memref<2x512xbf16, #tpu.memory_space<vmem>>, vector<2x512xbf16>
    %c0_1 = arith.constant 0 : index
    %c0_2 = arith.constant 0 : index
    %1 = vector.load %arg1[%c0_1, %c0_2] : memref<512x64xbf16, #tpu.memory_space<vmem>>, vector<512x64xbf16>
    %cst = arith.constant dense<0.000000e+00> : vector<2x64xf32>
    %2 = tpu.matmul %0, %1, %cst {dimension_numbers = #tpu.dot_dimension_numbers<[1], [0], [0], [1], [0, 0, 1, 1], [], []>} : vector<2x512xbf16>, vector<512x64xbf16>, vector<2x64xf32> -> vector<2x64xf32>
    %c0_3 = arith.constant 0 : index
    %c0_4 = arith.constant 0 : index
    %3 = vector.load %arg2[%c0_3, %c0_4] : memref<1x64xf32, #tpu.memory_space<vmem>>, vector<1x64xf32>
    %4 = vector.broadcast %3 : vector<1x64xf32> to vector<2x64xf32>
    %5 = arith.addf %2, %4 : vector<2x64xf32>
    %cst_5 = arith.constant 0.000000e+00 : f32
    %6 = vector.broadcast %cst_5 : f32 to vector<2x64xf32>
    %7 = arith.maximumf %5, %6 : vector<2x64xf32>
    %8 = arith.truncf %7 : vector<2x64xf32> to vector<2x64xbf16>
    %c0_6 = arith.constant 0 : index
    %c0_7 = arith.constant 0 : index
    %9 = vector.load %arg3[%c0_6, %c0_7] : memref<64x5xbf16, #tpu.memory_space<vmem>>, vector<64x5xbf16>
    %cst_8 = arith.constant dense<0.000000e+00> : vector<2x5xf32>
    %10 = tpu.matmul %8, %9, %cst_8 {dimension_numbers = #tpu.dot_dimension_numbers<[1], [0], [0], [1], [0, 0, 1, 1], [], []>} : vector<2x64xbf16>, vector<64x5xbf16>, vector<2x5xf32> -> vector<2x5xf32>
    %c0_9 = arith.constant 0 : index
    %c0_10 = arith.constant 0 : index
    %11 = vector.load %arg4[%c0_9, %c0_10] : memref<1x5xf32, #tpu.memory_space<vmem>>, vector<1x5xf32>
    %12 = vector.broadcast %11 : vector<1x5xf32> to vector<2x5xf32>
    %13 = arith.addf %10, %12 : vector<2x5xf32>
    %c0_11 = arith.constant 0 : index
    %c0_12 = arith.constant 0 : index
    %14 = vector.load %arg5[%c0_11, %c0_12] : memref<2x5xf32, #tpu.memory_space<vmem>>, vector<2x5xf32>
    tpu.vector_store %arg5[%c0_11, %c0_12], %13 {strides = array<i32>} : memref<2x5xf32, #tpu.memory_space<vmem>>, vector<2x5xf32>,
    return
  }
}

</mosaic_0001>

<bundles_post_ra>
// kernel: _lambda_.3
= control target key start
LH: loop header
LB: loop body
LE: loop exit
PB: predicated region body
PF: predicated region fallthrough
CT: control target
= control target key end

     0   :  { %s2397_s12 = smov 0   ;;  %s2812_s0 = inlined_call_operand.vmem [shape: bf16[2,32,32], index: 0, kind: input, shape index: {}]   ;;  %s2813_s1 = inlined_call_operand.vmem [shape: bf16[288,448], index: 1, kind: input, shape index: {}]   ;;  %s2814_s2 = inlined_call_operand.vmem [shape: f32[2,448], index: 2, kind: input, shape index: {}]   ;;  %s2815_s3 = inlined_call_operand.vmem [shape: bf16[2,24,448], index: 3, kind: output, shape index: {}]  }
   0x1 LB: > { %s1968_s13 = sadd.s32 4294967295, %s2374_s12   ;;  %p1972_p0 = scmp.ge.s32.totalorder %s2374_s12, 1  ;;  %s2374_s12 = sphi %s2397_s12, %s13_s12  }
   0x2   : > { %p137_p1 = scmp.lt.s32.totalorder %s2374_s12, 3 }
   0x4   : > { %p138_p2 = pnand %p1972_p0, %p137_p1 }
   0x5   : > { %v2249_v0 = vld [vmem:[%s2813_s1 + $0x44] ss:$16 sps:$4 sm:$0xff] (!%p138_p2)   ;;  %p161_p3 = scmp.lt.s32.totalorder (!%p138_p2), %s1968_s13, 1  ;;  %v2251_v1 = vld [vmem:[%s2813_s1 + $0x4c] ss:$16 sps:$4 sm:$0xff] (!%p138_p2)   ;;  %v2376_v2 = vmov (!%p138_p2), 0  }
   0x6   : > { %141 = sbr.rel (%p138_p2) target bundleno = 385 (0x181), region = 32  ;;  %297 = vmatprep.mubr.bf16.mxu0 (!%p138_p2), %v2376_v2  ;;  %348 = vmatprep.mubr.bf16.mxu1 (!%p138_p2), %v2376_v2  ;;  %v2253_v3 = vld [vmem:[%s2813_s1 + $0x40] ss:$16 sps:$4 sm:$0xff] (!%p138_p2)   ;;  %v2254_v4 = vld [vmem:[%s2813_s1 + $0x48] ss:$16 sps:$4 sm:$0xff] (!%p138_p2)   ;;  %vm258_vm1 = vcmask (!%p138_p2), 261120  }
   0x7   : > { %265 = vmatprep.subr.bf16.mxu0 (!%p138_p2), %v2249_v0  ;;  %316 = vmatprep.subr.bf16.mxu1 (!%p138_p2), %v2251_v1  ;;  %v2255_v5 = vld [vmem:[%s2813_s1 + $0x64] ss:$16 sps:$4 sm:$0xff] (!%p138_p2)   ;;  %v2257_v6 = vld [vmem:[%s2813_s1 + $0x6c] ss:$16 sps:$4 sm:$0xff] (!%p138_p2)   ;;  %v2259_v7 = vld [vmem:[%s2813_s1 + $0x60] ss:$16 sps:$4 sm:$0xff] (!%p138_p2)  }
   0x8   : > { %266 = vmatpush1.bf16.msra.mxu0 (!%p138_p2), %v2253_v3  ;;  %317 = vmatpush1.bf16.msra.mxu1 (!%p138_p2), %v2254_v4  ;;  %v2260_v8 = vld [vmem:[%s2813_s1 + $0x68] ss:$16 sps:$4 sm:$0xff] (!%p138_p2)   ;;  %v2263_v9 = vld [vmem:[%s2813_s1 + $0x4] ss:$16 sps:$4 sm:$0xff] (!%p138_p2)   ;;  %v2266_v10 = vld [vmem:[%s2813_s1 + $0xc] ss:$16 sps:$4 sm:$0xff] (!%p138_p2)  }
   0x9   : > { %267 = vmatprep.subr.bf16.mxu0 (!%p138_p2), %v2255_v5  ;;  %318 = vmatprep.subr.bf16.mxu1 (!%p138_p2), %v2257_v6  ;;  %vm202_vm0 = vsmask.f32 (!%p138_p2), 7424  ;;  %v2261_v23 = vld [vmem:[%s2813_s1] ss:$16 sps:$4 sm:$0xff] (!%p138_p2)   ;;  %v2264_v24 = vld [vmem:[%s2813_s1 + $0x8] ss:$16 sps:$4 sm:$0xff] (!%p138_p2)  }
   0xa   : > { %v2271_v26 = vld [vmem:[%s2813_s1 + $0x24] ss:$16 sps:$4 sm:$0xff] (!%p138_p2)   ;;  %v2274_v28 = vld [vmem:[%s2813_s1 + $0x2c] ss:$16 sps:$4 sm:$0xff] (!%p138_p2)   ;;  %v2269_v29 = vld [vmem:[%s2813_s1 + $0x20] ss:$16 sps:$4 sm:$0xff] (!%p138_p2)  }
   0xb   : > { %v2272_v31 = vld [vmem:[%s2813_s1 + $0x28] ss:$16 sps:$4 sm:$0xff] (!%p138_p2)   ;;  %v2277_v32 = vld [vmem:[%s2813_s1 + $0x84] ss:$16 sps:$4 sm:$0xff] (!%p138_p2)   ;;  %v2280_v33 = vld [vmem:[%s2813_s1 + $0x8c] ss:$16 sps:$4 sm:$0xff] (!%p138_p2)  }
   0xc   : > { %268 = vmatpush1.bf16.msra.mxu0 (!%p138_p2), %v2259_v7  ;;  %319 = vmatpush1.bf16.msra.mxu1 (!%p138_p2), %v2260_v8  ;;  %v2275_v35 = vld [vmem:[%s2813_s1 + $0x80] ss:$16 sps:$4 sm:$0xff] (!%p138_p2)   ;;  %v2278_v36 = vld [vmem:[%s2813_s1 + $0x88] ss:$16 sps:$4 sm:$0xff] (!%p138_p2)   ;;  %v2283_v38 = vld [vmem:[%s2813_s1 + $0xa4] ss:$16 sps:$4 sm:$0xff] (!%p138_p2)  }
   0xd   : > { %s2819_s13 = smov (!%p161_p3, %s1968_s13), 1  ;;  %413 = vmatprep.subr.bf16.mxu0 %v2263_v9  ;;  %464 = vmatprep.subr.bf16.mxu1 %v2266_v10  ;;  %v2286_v40 = vld [vmem:[%s2813_s1 + $0xac] ss:$16 sps:$4 sm:$0xff]   ;;  %v2281_v41 = vld [vmem:[%s2813_s1 + $0xa0] ss:$16 sps:$4 sm:$0xff]   ;;  %vm527_vm3 = vcmask 1046528  }
   0xe   : > { %s2104_s28 = sshll.u32 %s2819_s13, 4  ;;  %v2284_v42 = vld [vmem:[%s2813_s1 + $0xa8] ss:$16 sps:$4 sm:$0xff]   ;;  %v2290_v43 = vld [vmem:[%s2813_s1 + $0xc4] ss:$16 sps:$4 sm:$0xff]   ;;  %vm1259_vm4 = vcmask 1044480  }
   0xf   : > { %s2437_s6 = scalar_lea.vmem %s2812_s0, %s2104_s28  ;;  %v2293_v44 = vld [vmem:[%s2813_s1 + $0xcc] ss:$16 sps:$4 sm:$0xff]   ;;  %vm1069_vm2 = vsmask.f32 5376  ;;  %v2288_v3 = vld [vmem:[%s2813_s1 + $0xc0] ss:$16 sps:$4 sm:$0xff]  }
  0x10   : > { %v172_v11 = vld [vmem:[%s2437_s6] sm:$0xf]  ;;  %v2447_v12 = vld [vmem:[%s2437_s6 + $0x4] sm:$0xf]  ;;  %v2450_v13 = vld [vmem:[%s2437_s6 + $0x8] sm:$0xf] }
  0x11   : > { %v183_v14 = vld [vmem:[%s2437_s6 + $0xc] sm:$0x1]  ;;  %v1976_v15 = vcombine.low %v172_v11, %v2447_v12  ;;  %v2459_v19 = vcombine.low %v2447_v12, %v2450_v13  ;;  %v881_v37 = vld [vmem:[%s2437_s6] sm:$0xc]  ;;  %v1990_v49 = vcombine.low %v2450_v13, %v2450_v13  ;;  %v2291_v7 = vld [vmem:[%s2813_s1 + $0xc8] ss:$16 sps:$4 sm:$0xff]  }
  0x12   : > { %v2455_v16 = vcombine.low %v2450_v13, %v183_v14  ;;  %v2506_v39 = vcombine.low %v881_v37, %v2447_v12  ;;  %v515_v46 = vld [vmem:[%s2437_s6] sm:$0xe]  ;;  %v1057_v48 = vld [vmem:[%s2437_s6 + $0xc] sm:$0x7]  ;;  %v2297_v11 = vld [vmem:[%s2813_s1 + $0xe4] ss:$16 sps:$4 sm:$0xff]  }
  0x13   : > { %v204_v17 = vshrl.u32 %v1976_v15, 16  ;;  %v206_v18 = vshll.u32 %v1976_v15, 16  ;;  %v2042_v50 = vcombine.low %v2450_v13, %v1057_v48  ;;  %v2003_v53 = vcombine.low %v515_v46, %v2447_v12  ;;  %v1247_v61 = vld [vmem:[%s2437_s6] sm:$0x8]  ;;  %v691_v62 = vld [vmem:[%s2437_s6 + $0xc] sm:$0x3] }
  0x14   : > { %v211_v20 = vshll.u32 %v2455_v16, 16  ;;  %v215_v30 = vshrl.u32 %v2455_v16, 16  ;;  %v1071_v45 = vshrl.u32 %v2506_v39, 16  ;;  %v1074_v47 = vshll.u32 %v2506_v39, 16  ;;  %v2567_v14 = vld [vmem:[%s2437_s6 + $0xc] sm:$0xf] }
  0x15   : > { %v208_v21 = vrot.slane %v206_v18, 1  ;;  %v1079_v54 = vshrl.u32 %v2042_v50, 16  ;;  %v1082_v55 = vshll.u32 %v2042_v50, 16  ;;  %v528_v59 = vrot.slane %v2003_v53, 1  ;;  %v2308_v46 = vld [vmem:[%s2813_s1 + $0x120] ss:$16 sps:$4 sm:$0xff]  }
  0x16   : > { %v213_v22 = vrot.slane %v211_v20, 1  ;;  %v1073_v51 = vrot.slane %v1071_v45, 2  ;;  %v1076_v52 = vrot.slane %v1074_v47, 3  ;;  %v529_v60 = vrot.slane %v2455_v16, 1  ;;  %v2295_v20 = vld [vmem:[%s2813_s1 + $0xe0] ss:$16 sps:$4 sm:$0xff]  }
  0x17   : > { %v209_v25 = vor.u32 %v208_v21, %v204_v17  ;;  %v1081_v57 = vrot.slane %v1079_v54, 2  ;;  %v1084_v58 = vrot.slane %v1082_v55, 3  ;;  %v2055_v0 = vcombine.low %v1247_v61, %v2447_v12  ;;  %v2313_v45 = vld [vmem:[%s2813_s1 + $0x12c] ss:$16 sps:$4 sm:$0xff]   ;;  %v2311_v47 = vld [vmem:[%s2813_s1 + $0x128] ss:$16 sps:$4 sm:$0xff]  }
  0x18   : > { %v217_v34 = vor.u32 %v215_v30, %v213_v22  ;;  %v1077_v56 = vor.u32 %v1076_v52, %v1073_v51  ;;  %v2545_v1 = vrot.slane %v2042_v50, 3  ;;  %v530_v8 = vsel %vm527_vm3, %v528_v59, %v529_v60  ;;  %v2316_v48 = vld [vmem:[%s2813_s1 + $0x144] ss:$16 sps:$4 sm:$0xff]   ;;  %v2314_v52 = vld [vmem:[%s2813_s1 + $0x140] ss:$16 sps:$4 sm:$0xff]   ;;  %s2239_s17 = smul.u32 48, %s2819_s13 }
  0x19   : > { %v214_v27 = vsel %vm202_vm0, %v209_v25, %v213_v22  ;;  %v2542_v63 = vor.u32 %v1084_v58, %v1081_v57  ;;  %v1260_v5 = vrot.slane %v2055_v0, 3  ;;  %v1437_v6 = vshrl.u32 %v2055_v0, 16  ;;  %v2323_v55 = vld [vmem:[%s2813_s1 + $0x164] ss:$16 sps:$4 sm:$0xff]   ;;  %v2324_v57 = vld [vmem:[%s2813_s1 + $0x168] ss:$16 sps:$4 sm:$0xff]  }
  0x1a   : > { %1986 = vmatmul.mubr.msk.bf16.vlgmr.msra.gmra.mrb[0].mxu0 %vm258_vm1, %v214_v27  ;;  %1988 = vmatmul.mubr.msk.bf16.vlgmr.msra.gmra.mrb[0].mxu1 %vm258_vm1, %v214_v27  ;;  %v2558_v9 = vcombine.low %v2450_v13, %v691_v62  ;;  %v1440_v10 = vshll.u32 %v2055_v0, 16  ;;  %v2068_v16 = vcombine.low %v2450_v13, %v2567_v14  ;;  %v705_v21 = vshrl.u32 %v2003_v53, 16  ;;  %v2303_v27 = vld [vmem:[%s2813_s1 + $0x104] ss:$16 sps:$4 sm:$0xff]   ;;  %v2332_v59 = vld [vmem:[%s2813_s1 + $0x18c] ss:$16 sps:$4 sm:$0xff]   ;;  %s2789_s13 = scalar_lea.vmem %s2815_s3, %s2239_s17 }
  0x1b   : > { %414 = vmatpush1.bf16.msra.mxu0 %v2261_v23  ;;  %465 = vmatpush1.bf16.msra.mxu1 %v2264_v24  ;;  %v2552_v4 = vsel %vm1069_vm2, %v1077_v56, %v2542_v63  ;;  %v2564_v12 = vsel %vm1259_vm4, %v1260_v5, %v2545_v1  ;;  %v1439_v17 = vrot.slane %v1437_v6, 3  ;;  %v708_v22 = vshll.u32 %v2003_v53, 16  ;;  %v2298_v23 = vld [vmem:[%s2813_s1 + $0xe8] ss:$16 sps:$4 sm:$0xff]   ;;  %v2321_v56 = vld [vmem:[%s2813_s1 + $0x160] ss:$16 sps:$4 sm:$0xff]  }
  0x1c   : > { %307 = vmatprep.mubr.bf16.mxu0 %v2376_v2  ;;  %358 = vmatprep.mubr.bf16.mxu1 %v2376_v2  ;;  %v1442_v18 = vrot.slane %v1440_v10, 4  ;;  %v713_v13 = vshrl.u32 %v2558_v9, 16  ;;  %v716_v24 = vshll.u32 %v2558_v9, 16  ;;  %v1445_v25 = vshrl.u32 %v2068_v16, 16  ;;  %v2317_v53 = vld [vmem:[%s2813_s1 + $0x148] ss:$16 sps:$4 sm:$0xff]  }
  0x1d   : > { %415 = vmatprep.subr.bf16.mxu0 %v2271_v26  ;;  %466 = vmatprep.subr.bf16.mxu1 %v2274_v28  ;;  %v1448_v26 = vshll.u32 %v2068_v16, 16  ;;  %v2306_v28 = vld [vmem:[%s2813_s1 + $0x10c] ss:$16 sps:$4 sm:$0xff]   ;;  %vm1435_vm5 = vsmask.f32 4352  ;;  %v894_v50 = vrot.slane %v2506_v39, 2 }
  0x1e   : > { %v1447_v30 = vrot.slane %v1445_v25, 3  ;;  %vm703_vm6 = vsmask.f32 6400  ;;  %v895_v51 = vrot.slane %v2558_v9, 2  ;;  %vm893_vm7 = vcmask 1045504  }
  0x1f   : > { %416 = vmatpush1.bf16.msra.mxu0 %v2269_v29  ;;  %467 = vmatpush1.bf16.msra.mxu1 %v2272_v31  ;;  %v1443_v29 = vor.u32 %v1442_v18, %v1439_v17  ;;  %v1450_v31 = vrot.slane %v1448_v26, 4  ;;  %v2326_v39 = vld [vmem:[%s2813_s1 + $0x16c] ss:$16 sps:$4 sm:$0xff]   ;;  %v2329_v58 = vld [vmem:[%s2813_s1 + $0x184] ss:$16 sps:$4 sm:$0xff]   ;;  %vm1905_vm8 = vcmask 1043456  }
  0x20   : > { %577 = vmatprep.subr.bf16.mxu0 %v2277_v32  ;;  %628 = vmatprep.subr.bf16.mxu1 %v2280_v33  ;;  %v707_v32 = vrot.slane %v705_v21, 1  ;;  %v710_v33 = vrot.slane %v708_v22, 2  ;;  %v896_v54 = vsel %vm893_vm7, %v894_v50, %v895_v51  ;;  %v2330_v61 = vld [vmem:[%s2813_s1 + $0x188] ss:$16 sps:$4 sm:$0xff]   ;;  %v2336_v62 = vld [vmem:[%s2813_s1 + $0x1a4] ss:$16 sps:$4 sm:$0xff]   ;;  %v2082_v22 = vcombine.low %v2567_v14, %v2567_v14 }
  0x21   : > { %v2339_v0 = vld [vmem:[%s2813_s1 + $0x1ac] ss:$16 sps:$4 sm:$0xff]   ;;  %v2337_v5 = vld [vmem:[%s2813_s1 + $0x1a8] ss:$16 sps:$4 sm:$0xff]   ;;  %v2342_v6 = vld [vmem:[%s2813_s1 + $0x1c4] ss:$16 sps:$4 sm:$0xff]  }
  0x22   : > { %1987 = vmatmul.mubr.msk.bf16.gmra.mrb[4].mxu0 %vm258_vm1, %v217_v34  ;;  %1989 = vmatmul.mubr.msk.bf16.gmra.mrb[4].mxu1 %vm258_vm1, %v217_v34  ;;  %v715_v34 = vrot.slane %v713_v13, 1  ;;  %v2349_v9 = vld [vmem:[%s2813_s1 + $0x1e4] ss:$16 sps:$4 sm:$0xff]   ;;  %v2347_v10 = vld [vmem:[%s2813_s1 + $0x1e0] ss:$16 sps:$4 sm:$0xff]   ;;  %vm1906_vm9 = vcmask 523268  }
  0x23   : > { %445 = vmatprep.mubr.bf16.mxu0 %v2376_v2  ;;  %496 = vmatprep.mubr.bf16.mxu1 %v2376_v2  ;;  %v2353_v16 = vld [vmem:[%s2813_s1 + $0x200] ss:$16 sps:$4 sm:$0xff]   ;;  %v2356_v17 = vld [vmem:[%s2813_s1 + $0x208] ss:$16 sps:$4 sm:$0xff]   ;;  %v2362_v18 = vld [vmem:[%s2813_s1 + $0x224] ss:$16 sps:$4 sm:$0xff]  }
  0x24   : > { %v2363_v21 = vld [vmem:[%s2813_s1 + $0x228] ss:$16 sps:$4 sm:$0xff]   ;;  %v1783_v26 = vld [vmem:[%s2814_s2] ss:$2 sm:$0xf]  ;;  %vm2793_vm10 = vmor %vm1906_vm9, %vm1905_vm8 }
  0x2a   : > { %1999 = vmatmul.mubr.msk.bf16.vlgmr.msra.gmra.mrb[0].mxu0 %vm258_vm1, %v1976_v15  ;;  %2001 = vmatmul.mubr.msk.bf16.vlgmr.msra.gmra.mrb[0].mxu1 %vm258_vm1, %v1976_v15  ;;  %v2300_v15 = vld [vmem:[%s2813_s1 + $0xec] ss:$16 sps:$4 sm:$0xff]  }
  0x2b   : > { %578 = vmatpush1.bf16.msra.mxu0 %v2275_v35  ;;  %629 = vmatpush1.bf16.msra.mxu1 %v2278_v36  ;;  %v718_v35 = vrot.slane %v716_v24, 2  ;;  %v2592_v36 = vor.u32 %v1450_v31, %v1447_v30 }
  0x2c   : > { %455 = vmatprep.mubr.bf16.mxu0 %v2376_v2  ;;  %506 = vmatprep.mubr.bf16.mxu1 %v2376_v2 }
  0x2d   : > { %579 = vmatprep.subr.bf16.mxu0 %v2283_v38  ;;  %630 = vmatprep.subr.bf16.mxu1 %v2286_v40  ;;  %v2595_v37 = vsel %vm1435_vm5, %v1443_v29, %v2592_v36  ;;  %v711_v38 = vor.u32 %v710_v33, %v707_v32  ;;  %v719_v40 = vor.u32 %v718_v35, %v715_v34 }
  0x2f   : > { %580 = vmatpush1.bf16.msra.mxu0 %v2281_v41  ;;  %631 = vmatpush1.bf16.msra.mxu1 %v2284_v42  ;;  %v2301_v41 = vld [vmem:[%s2813_s1 + $0x100] ss:$16 sps:$4 sm:$0xff]   ;;  %v2304_v42 = vld [vmem:[%s2813_s1 + $0x108] ss:$16 sps:$4 sm:$0xff]  }
  0x30   : > { %767 = vmatprep.subr.bf16.mxu0 %v2290_v43  ;;  %818 = vmatprep.subr.bf16.mxu1 %v2293_v44  ;;  %v720_v43 = vsel %vm703_vm6, %v711_v38, %v719_v40  ;;  %v2310_v44 = vld [vmem:[%s2813_s1 + $0x124] ss:$16 sps:$4 sm:$0xff]  }
  0x32   : > { %2000 = vmatmul.mubr.msk.bf16.gmra.mrb[4].mxu0 %vm258_vm1, %v1990_v49  ;;  %2002 = vmatmul.mubr.msk.bf16.gmra.mrb[4].mxu1 %vm258_vm1, %v1990_v49  ;;  %v2319_v49 = vld [vmem:[%s2813_s1 + $0x14c] ss:$16 sps:$4 sm:$0xff]  }
  0x33   : > { %609 = vmatprep.mubr.bf16.mxu0 %v2376_v2  ;;  %660 = vmatprep.mubr.bf16.mxu1 %v2376_v2 }
  0x3a   : > { %2012 = vmatmul.mubr.msk.bf16.vlgmr.msra.gmra.mrb[0].mxu0 %vm258_vm1, %v530_v8  ;;  %2014 = vmatmul.mubr.msk.bf16.vlgmr.msra.gmra.mrb[0].mxu1 %vm258_vm1, %v530_v8  ;;  %v2343_v8 = vld [vmem:[%s2813_s1 + $0x1c8] ss:$16 sps:$4 sm:$0xff]  }
  0x3b   : > { %768 = vmatpush1.bf16.msra.mxu0 %v2288_v3  ;;  %819 = vmatpush1.bf16.msra.mxu1 %v2291_v7  ;;  %v2334_v3 = vld [vmem:[%s2813_s1 + $0x1a0] ss:$16 sps:$4 sm:$0xff]  }
  0x3c   : > { %619 = vmatprep.mubr.bf16.mxu0 %v2376_v2  ;;  %670 = vmatprep.mubr.bf16.mxu1 %v2376_v2  ;;  %v2340_v7 = vld [vmem:[%s2813_s1 + $0x1c0] ss:$16 sps:$4 sm:$0xff]  }
  0x3d   : > { %769 = vmatprep.subr.bf16.mxu0 %v2297_v11  ;;  %820 = vmatprep.subr.bf16.mxu1 %v2300_v15  ;;  %v2350_v11 = vld [vmem:[%s2813_s1 + $0x1e8] ss:$16 sps:$4 sm:$0xff]   ;;  %v2355_v15 = vld [vmem:[%s2813_s1 + $0x204] ss:$16 sps:$4 sm:$0xff]  }
  0x3f   : > { %770 = vmatpush1.bf16.msra.mxu0 %v2295_v20  ;;  %821 = vmatpush1.bf16.msra.mxu1 %v2298_v23  ;;  %v2360_v20 = vld [vmem:[%s2813_s1 + $0x220] ss:$16 sps:$4 sm:$0xff]   ;;  %v1785_v23 = vlaneseq }
  0x40   : > { %943 = vmatprep.subr.bf16.mxu0 %v2303_v27  ;;  %994 = vmatprep.subr.bf16.mxu1 %v2306_v28 }
  0x41   : > { %v1786_v13 = vshrl.u32 %v1785_v23, 7 }
  0x42   : > { %2013 = vmatmul.mubr.msk.bf16.gmra.mrb[4].mxu0 %vm258_vm1, %v529_v60  ;;  %2015 = vmatmul.mubr.msk.bf16.gmra.mrb[4].mxu1 %vm258_vm1, %v529_v60  ;;  %v2327_v60 = vld [vmem:[%s2813_s1 + $0x180] ss:$16 sps:$4 sm:$0xff]  }
  0x43   : > { %799 = vmatprep.mubr.bf16.mxu0 %v2376_v2  ;;  %850 = vmatprep.mubr.bf16.mxu1 %v2376_v2  ;;  %v1787_v24 = vsub.s32 0, %v1786_v13  ;;  %v1795_v25 = vsub.s32 2, %v1786_v13  ;;  %v1799_v27 = vsub.s32 3, %v1786_v13 }
  0x45   : > { %v1788_v28 = vrot.slane %v1783_v26, %v1787_v24  ;;  %v1796_v14 = vrot.slane %v1783_v26, %v1795_v25  ;;  %v1800_v30 = vrot.slane %v1783_v26, %v1799_v27 }
  0x4a   : > { %2025 = vmatmul.mubr.msk.bf16.vlgmr.msra.gmra.mrb[0].mxu0 %vm258_vm1, %v720_v43  ;;  %2027 = vmatmul.mubr.msk.bf16.vlgmr.msra.gmra.mrb[0].mxu1 %vm258_vm1, %v720_v43 }
  0x4b   : > { %944 = vmatpush1.bf16.msra.mxu0 %v2301_v41  ;;  %995 = vmatpush1.bf16.msra.mxu1 %v2304_v42 }
  0x4c   : > { %809 = vmatprep.mubr.bf16.mxu0 %v2376_v2  ;;  %860 = vmatprep.mubr.bf16.mxu1 %v2376_v2 }
  0x4d   : > { %945 = vmatprep.subr.bf16.mxu0 %v2310_v44  ;;  %996 = vmatprep.subr.bf16.mxu1 %v2313_v45 }
  0x4f   : > { %946 = vmatpush1.bf16.msra.mxu0 %v2308_v46  ;;  %997 = vmatpush1.bf16.msra.mxu1 %v2311_v47 }
  0x50   : > { %1133 = vmatprep.subr.bf16.mxu0 %v2316_v48  ;;  %1184 = vmatprep.subr.bf16.mxu1 %v2319_v49 }
  0x52   : > { %2026 = vmatmul.mubr.msk.bf16.gmra.mrb[4].mxu0 %vm258_vm1, %v719_v40  ;;  %2028 = vmatmul.mubr.msk.bf16.gmra.mrb[4].mxu1 %vm258_vm1, %v719_v40 }
  0x53   : > { %975 = vmatprep.mubr.bf16.mxu0 %v2376_v2  ;;  %1026 = vmatprep.mubr.bf16.mxu1 %v2376_v2 }
  0x5a   : > { %2038 = vmatmul.mubr.msk.bf16.vlgmr.msra.gmra.mrb[0].mxu0 %vm258_vm1, %v896_v54  ;;  %2040 = vmatmul.mubr.msk.bf16.vlgmr.msra.gmra.mrb[0].mxu1 %vm258_vm1, %v896_v54 }
  0x5b   : > { %1134 = vmatpush1.bf16.msra.mxu0 %v2314_v52  ;;  %1185 = vmatpush1.bf16.msra.mxu1 %v2317_v53 }
  0x5c   : > { %985 = vmatprep.mubr.bf16.mxu0 %v2376_v2  ;;  %1036 = vmatprep.mubr.bf16.mxu1 %v2376_v2 }
  0x5d   : > { %1135 = vmatprep.subr.bf16.mxu0 %v2323_v55  ;;  %1186 = vmatprep.subr.bf16.mxu1 %v2326_v39 }
  0x5f   : > { %1136 = vmatpush1.bf16.msra.mxu0 %v2321_v56  ;;  %1187 = vmatpush1.bf16.msra.mxu1 %v2324_v57 }
  0x60   : > { %1309 = vmatprep.subr.bf16.mxu0 %v2329_v58  ;;  %1360 = vmatprep.subr.bf16.mxu1 %v2332_v59 }
  0x62   : > { %2039 = vmatmul.mubr.msk.bf16.gmra.mrb[4].mxu0 %vm258_vm1, %v895_v51  ;;  %2041 = vmatmul.mubr.msk.bf16.gmra.mrb[4].mxu1 %vm258_vm1, %v895_v51 }
  0x63   : > { %1165 = vmatprep.mubr.bf16.mxu0 %v2376_v2  ;;  %1216 = vmatprep.mubr.bf16.mxu1 %v2376_v2 }
  0x6a   : > { %2051 = vmatmul.mubr.msk.bf16.vlgmr.msra.gmra.mrb[0].mxu0 %vm258_vm1, %v2552_v4  ;;  %2053 = vmatmul.mubr.msk.bf16.vlgmr.msra.gmra.mrb[0].mxu1 %vm258_vm1, %v2552_v4  ;;  %v2345_v4 = vld [vmem:[%s2813_s1 + $0x1cc] ss:$16 sps:$4 sm:$0xff]  }
  0x6b   : > { %1310 = vmatpush1.bf16.msra.mxu0 %v2327_v60  ;;  %1361 = vmatpush1.bf16.msra.mxu1 %v2330_v61 }
  0x6c   : > { %1175 = vmatprep.mubr.bf16.mxu0 %v2376_v2  ;;  %1226 = vmatprep.mubr.bf16.mxu1 %v2376_v2 }
  0x6d   : > { %1311 = vmatprep.subr.bf16.mxu0 %v2336_v62  ;;  %1362 = vmatprep.subr.bf16.mxu1 %v2339_v0 }
  0x6f   : > { %1312 = vmatpush1.bf16.msra.mxu0 %v2334_v3  ;;  %1363 = vmatpush1.bf16.msra.mxu1 %v2337_v5 }
  0x70   : > { %1499 = vmatprep.subr.bf16.mxu0 %v2342_v6  ;;  %1550 = vmatprep.subr.bf16.mxu1 %v2345_v4 }
  0x72   : > { %2052 = vmatmul.mubr.msk.bf16.gmra.mrb[4].mxu0 %vm258_vm1, %v2542_v63  ;;  %2054 = vmatmul.mubr.msk.bf16.gmra.mrb[4].mxu1 %vm258_vm1, %v2542_v63  ;;  %v2352_v63 = vld [vmem:[%s2813_s1 + $0x1ec] ss:$16 sps:$4 sm:$0xff]  }
  0x73   : > { %1341 = vmatprep.mubr.bf16.mxu0 %v2376_v2  ;;  %1392 = vmatprep.mubr.bf16.mxu1 %v2376_v2 }
  0x7a   : > { %2064 = vmatmul.mubr.msk.bf16.vlgmr.msra.gmra.mrb[0].mxu0 %vm258_vm1, %v2564_v12  ;;  %2066 = vmatmul.mubr.msk.bf16.vlgmr.msra.gmra.mrb[0].mxu1 %vm258_vm1, %v2564_v12  ;;  %v2358_v12 = vld [vmem:[%s2813_s1 + $0x20c] ss:$16 sps:$4 sm:$0xff]  }
  0x7b   : > { %1500 = vmatpush1.bf16.msra.mxu0 %v2340_v7  ;;  %1551 = vmatpush1.bf16.msra.mxu1 %v2343_v8 }
  0x7c   : > { %1351 = vmatprep.mubr.bf16.mxu0 %v2376_v2  ;;  %1402 = vmatprep.mubr.bf16.mxu1 %v2376_v2 }
  0x7d   : > { %1501 = vmatprep.subr.bf16.mxu0 %v2349_v9  ;;  %1552 = vmatprep.subr.bf16.mxu1 %v2352_v63 }
  0x7f   : > { %1502 = vmatpush1.bf16.msra.mxu0 %v2347_v10  ;;  %1553 = vmatpush1.bf16.msra.mxu1 %v2350_v11 }
  0x80   : > { %1669 = vmatprep.subr.bf16.mxu0 %v2355_v15  ;;  %1720 = vmatprep.subr.bf16.mxu1 %v2358_v12 }
  0x82   : > { %2065 = vmatmul.mubr.msk.bf16.gmra.mrb[4].mxu0 %vm258_vm1, %v2545_v1  ;;  %2067 = vmatmul.mubr.msk.bf16.gmra.mrb[4].mxu1 %vm258_vm1, %v2545_v1  ;;  %v2365_v1 = vld [vmem:[%s2813_s1 + $0x22c] ss:$16 sps:$4 sm:$0xff]  }
  0x83   : > { %1531 = vmatprep.mubr.bf16.mxu0 %v2376_v2  ;;  %1582 = vmatprep.mubr.bf16.mxu1 %v2376_v2 }
  0x8a   : > { %2077 = vmatmul.mubr.msk.bf16.vlgmr.msra.gmra.mrb[0].mxu0 %vm258_vm1, %v2595_v37  ;;  %2079 = vmatmul.mubr.msk.bf16.vlgmr.msra.gmra.mrb[0].mxu1 %vm258_vm1, %v2595_v37 }
  0x8b   : > { %1670 = vmatpush1.bf16.msra.mxu0 %v2353_v16  ;;  %1721 = vmatpush1.bf16.msra.mxu1 %v2356_v17 }
  0x8c   : > { %1541 = vmatprep.mubr.bf16.mxu0 %v2376_v2  ;;  %1592 = vmatprep.mubr.bf16.mxu1 %v2376_v2 }
  0x8d   : > { %1671 = vmatprep.subr.bf16.mxu0 %v2362_v18  ;;  %1722 = vmatprep.subr.bf16.mxu1 %v2365_v1 }
  0x8f   : > { %1672 = vmatpush1.bf16.msra.mxu0 %v2360_v20  ;;  %1723 = vmatpush1.bf16.msra.mxu1 %v2363_v21 }
  0x92   : > { %2078 = vmatmul.mubr.msk.bf16.gmra.mrb[4].mxu0 %vm258_vm1, %v2592_v36  ;;  %2080 = vmatmul.mubr.msk.bf16.gmra.mrb[4].mxu1 %vm258_vm1, %v2592_v36 }
  0x93   : > { %1701 = vmatprep.mubr.bf16.mxu0 %v2376_v2  ;;  %1752 = vmatprep.mubr.bf16.mxu1 %v2376_v2 }
  0x9a   : > { %2091 = vmatmul.mubr.msk.bf16.vlgmr.msra.gmra.mrb[0].mxu0 %vm258_vm1, %v2459_v19  ;;  %2093 = vmatmul.mubr.msk.bf16.vlgmr.msra.gmra.mrb[0].mxu1 %vm258_vm1, %v2459_v19  ;;  %v1791_v19 = vsub.s32 1, %v1786_v13 }
  0x9b   : > { %1711 = vmatprep.mubr.bf16.mxu0 %v2376_v2  ;;  %1762 = vmatprep.mubr.bf16.mxu1 %v2376_v2  ;;  %v2095_v2 = vld [vmem:[%s2814_s2 + $0x1] ss:$2 sm:$0xf] }
  0x9c   : > { %v1792_v29 = vrot.slane %v1783_v26, %v1791_v19  ;;  %v1823_v31 = vrot.slane %v2095_v2, %v1787_v24  ;;  %v1831_v32 = vrot.slane %v2095_v2, %v1795_v25  ;;  %v1827_v35 = vrot.slane %v2095_v2, %v1791_v19 }
  0x9d   : > { %v1835_v36 = vrot.slane %v2095_v2, %v1799_v27 }
  0xa2   : > { %2092 = vmatmul.mubr.msk.bf16.gmra.mrb[4].mxu0 %vm258_vm1, %v2082_v22  ;;  %2094 = vmatmul.mubr.msk.bf16.gmra.mrb[4].mxu1 %vm258_vm1, %v2082_v22 }
 0x16d   : > { %v1703_v33 = vpop.f32.mrb[0].mxu0  ;;  %v1754_v34 = vpop.f32.mrb[0].mxu1 }
 0x16e   : > { %v1805_v37 = vmul.f32 %v1788_v28, %v1703_v33  ;;  %v1807_v38 = vmul.f32 %v1796_v14, %v1754_v34  ;;  %v1705_v40 = vpop.f32.mrb[1].mxu0  ;;  %v1756_v41 = vpop.f32.mrb[1].mxu1 }
 0x16f   : > { %v1806_v42 = vmul.f32 %v1792_v29, %v1705_v40  ;;  %v1808_v43 = vmul.f32 %v1800_v30, %v1756_v41  ;;  %v1707_v44 = vpop.f32.mrb[2].mxu0  ;;  %v1758_v45 = vpop.f32.mrb[2].mxu1 }
 0x170   : > { %v1840_v46 = vadd.f32 %v1823_v31, %v1805_v37  ;;  %v1842_v47 = vadd.f32 %v1831_v32, %v1807_v38  ;;  %v1809_v48 = vmul.f32 %v1788_v28, %v1707_v44  ;;  %v1811_v49 = vmul.f32 %v1796_v14, %v1758_v45  ;;  %v1709_v50 = vpop.f32.mrb[3].mxu0  ;;  %v1760_v51 = vpop.f32.mrb[3].mxu1 }
 0x171   : > { %v1841_v52 = vadd.f32 %v1827_v35, %v1806_v42  ;;  %v1843_v53 = vadd.f32 %v1835_v36, %v1808_v43  ;;  %v1810_v54 = vmul.f32 %v1792_v29, %v1709_v50  ;;  %v1812_v55 = vmul.f32 %v1800_v30, %v1760_v51 }
 0x172   : > { %v1852_v39 = vmax.f32 %v1840_v46, 0.0  ;;  %v1854_v56 = vmax.f32 %v1842_v47, 0.0  ;;  %v1844_v57 = vadd.f32 %v1823_v31, %v1809_v48  ;;  %v1846_v58 = vadd.f32 %v1831_v32, %v1811_v49 }
 0x173   : > { %v1853_v59 = vmax.f32 %v1841_v52, 0.0  ;;  %v1855_v60 = vmax.f32 %v1843_v53, 0.0  ;;  %v1845_v61 = vadd.f32 %v1827_v35, %v1810_v54  ;;  %v1847_v62 = vadd.f32 %v1835_v36, %v1812_v55 }
 0x174   : > { %v1856_v3 = vmax.f32 %v1844_v57, 0.0  ;;  %v1858_v5 = vmax.f32 %v1846_v58, 0.0 }
 0x175   : > { %v2105_v6 = vpack.c.bf16 %v1853_v59, %v1852_v39  ;;  %v2106_v4 = vpack.c.bf16 %v1855_v60, %v1854_v56  ;;  %v1857_v7 = vmax.f32 %v1845_v61, 0.0  ;;  %v1859_v8 = vmax.f32 %v1847_v62, 0.0  ;;  %v1713_v9 = vpop.f32.mrb[4].mxu0  ;;  %v1764_v63 = vpop.f32.mrb[4].mxu1 }
 0x176   : > { %v1813_v10 = vmul.f32 %v1788_v28, %v1713_v9  ;;  %v1815_v11 = vmul.f32 %v1796_v14, %v1764_v63  ;;  %v1715_v15 = vpop.f32.mrb[5].mxu0  ;;  %v1766_v12 = vpop.f32.mrb[5].mxu1 }
 0x177   : > { %1904 = vst [vmem:[%s2789_s13] sm:$0xff] %v2105_v6  ;;  %1908 = vst.msk [vmem:[%s2789_s13 + $0x8] sm:$0xff] %vm2793_vm10, %v2106_v4  ;;  %v2107_v16 = vpack.c.bf16 %v1857_v7, %v1856_v3  ;;  %v2108_v17 = vpack.c.bf16 %v1859_v8, %v1858_v5  ;;  %v1814_v18 = vmul.f32 %v1792_v29, %v1715_v15  ;;  %v1717_v20 = vpop.f32.mrb[6].mxu0  ;;  %v1768_v21 = vpop.f32.mrb[6].mxu1 }
 0x178   : > { %v1816_v1 = vmul.f32 %v1800_v30, %v1766_v12  ;;  %v1848_v22 = vadd.f32 %v1823_v31, %v1813_v10  ;;  %v1850_v23 = vadd.f32 %v1831_v32, %v1815_v11  ;;  %v1718_v13 = vpop.f32.mrb[7].mxu0  ;;  %v1769_v24 = vpop.f32.mrb[7].mxu1 }
 0x179   : > { %1909 = vst [vmem:[%s2789_s13 + $0x10] sm:$0xff] %v2107_v16  ;;  %1910 = vst.msk [vmem:[%s2789_s13 + $0x18] sm:$0xff] %vm2793_vm10, %v2108_v17  ;;  %v1849_v25 = vadd.f32 %v1827_v35, %v1814_v18 }
 0x17a   : > { %v1851_v26 = vadd.f32 %v1835_v36, %v1816_v1  ;;  %v1860_v19 = vmax.f32 %v1848_v22, 0.0  ;;  %v1862_v27 = vmax.f32 %v1850_v23, 0.0 }
 0x17b   : > { %v1861_v2 = vmax.f32 %v1849_v25, 0.0 }
 0x17c   : > { %v1863_v28 = vmax.f32 %v1851_v26, 0.0 }
 0x17d   : > { %v2109_v14 = vpack.c.bf16 %v1861_v2, %v1860_v19 }
 0x17e   : > { %v2110_v29 = vpack.c.bf16 %v1863_v28, %v1862_v27 }
 0x17f   : > { %1911 = vst [vmem:[%s2789_s13 + $0x20] sm:$0xff] %v2109_v14 }
 0x180   : > { %1912 = vst.msk [vmem:[%s2789_s13 + $0x28] sm:$0xff] %vm2793_vm10, %v2110_v29 }
 0x181 PF: > { %s13_s12 = sadd.s32 1, %s2374_s12  }
 0x182   : > { %p10_p4 = scmp.ge.s32.totalorder %s13_s12, 4  }
 0x184   :  { %12 = sbr.rel (!%p10_p4) target bundleno = 1 (0x1), region = 63 }

// kernel: _lambda_.4
= control target key start
LH: loop header
LB: loop body
LE: loop exit
PB: predicated region body
PF: predicated region fallthrough
CT: control target
= control target key end

     0   :  { %s1567_s12 = smov 0   ;;  %s1962_s0 = inlined_call_operand.vmem [shape: bf16[2,12,224], index: 0, kind: input, shape index: {}]   ;;  %s1963_s1 = inlined_call_operand.vmem [shape: bf16[896,256], index: 1, kind: input, shape index: {}]   ;;  %s1964_s2 = inlined_call_operand.vmem [shape: f32[2,256], index: 2, kind: input, shape index: {}]   ;;  %s1965_s3 = inlined_call_operand.vmem [shape: bf16[2,9,256], index: 3, kind: output, shape index: {}]  }
   0x1 LB: > { %s1207_s13 = sadd.s32 4294967295, %s1545_s12   ;;  %p1211_p0 = scmp.ge.s32.totalorder %s1545_s12, 1  ;;  %s1545_s12 = sphi %s1567_s12, %s13_s12  }
   0x2   : > { %p137_p1 = scmp.lt.s32.totalorder %s1545_s12, 3 }
   0x4   : > { %p138_p2 = pnand %p1211_p0, %p137_p1 }
   0x5   : > { %v1365_v0 = vld [vmem:[%s1963_s1 + $0xe4] ss:$8 sps:$4 sm:$0xff] (!%p138_p2)   ;;  %v1369_v2 = vld [vmem:[%s1963_s1 + $0xe0] ss:$8 sps:$4 sm:$0xff] (!%p138_p2)   ;;  %v1371_v4 = vld [vmem:[%s1963_s1 + $0xf4] ss:$8 sps:$4 sm:$0xff] (!%p138_p2)  }
   0x6   : > { %141 = sbr.rel (%p138_p2) target bundleno = 346 (0x15a), region = 32  ;;  %v1367_v1 = vld [vmem:[%s1963_s1 + $0x1c4] ss:$8 sps:$4 sm:$0xff] (!%p138_p2)   ;;  %397 = vmatprep.subr.bf16.mxu1 (!%p138_p2), %v1365_v0  ;;  %v1370_v3 = vld [vmem:[%s1963_s1 + $0x1c0] ss:$8 sps:$4 sm:$0xff] (!%p138_p2)   ;;  %p161_p3 = scmp.lt.s32.totalorder (!%p138_p2), %s1207_s13, 1 }
   0x7   : > { %810 = vmatprep.subr.bf16.mxu0 (!%p138_p2), %v1367_v1  ;;  %398 = vmatpush1.bf16.msra.mxu1 (!%p138_p2), %v1369_v2  ;;  %v1373_v5 = vld [vmem:[%s1963_s1 + $0x1d4] ss:$8 sps:$4 sm:$0xff] (!%p138_p2)   ;;  %v1375_v6 = vld [vmem:[%s1963_s1 + $0xf0] ss:$8 sps:$4 sm:$0xff] (!%p138_p2)   ;;  %v1377_v8 = vld [vmem:[%s1963_s1 + $0x104] ss:$8 sps:$4 sm:$0xff] (!%p138_p2)  }
   0x8   : > { %811 = vmatpush1.bf16.msra.mxu0 (!%p138_p2), %v1370_v3  ;;  %399 = vmatprep.subr.bf16.mxu1 (!%p138_p2), %v1371_v4  ;;  %v1376_v7 = vld [vmem:[%s1963_s1 + $0x1d0] ss:$8 sps:$4 sm:$0xff] (!%p138_p2)   ;;  %v1379_v9 = vld [vmem:[%s1963_s1 + $0x1e4] ss:$8 sps:$4 sm:$0xff] (!%p138_p2)   ;;  %v1381_v10 = vld [vmem:[%s1963_s1 + $0x100] ss:$8 sps:$4 sm:$0xff] (!%p138_p2)  }
   0x9   : > { %812 = vmatprep.subr.bf16.mxu0 (!%p138_p2), %v1373_v5  ;;  %v1382_v11 = vld [vmem:[%s1963_s1 + $0x1e0] ss:$8 sps:$4 sm:$0xff] (!%p138_p2)   ;;  %v1383_v12 = vld [vmem:[%s1963_s1 + $0x114] ss:$8 sps:$4 sm:$0xff] (!%p138_p2)   ;;  %v1387_v14 = vld [vmem:[%s1963_s1 + $0x110] ss:$8 sps:$4 sm:$0xff] (!%p138_p2)  }
   0xa   : > { %v1385_v13 = vld [vmem:[%s1963_s1 + $0x1f4] ss:$8 sps:$4 sm:$0xff] (!%p138_p2)   ;;  %v1388_v15 = vld [vmem:[%s1963_s1 + $0x1f0] ss:$8 sps:$4 sm:$0xff] (!%p138_p2)   ;;  %v1389_v16 = vld [vmem:[%s1963_s1 + $0x124] ss:$8 sps:$4 sm:$0xff] (!%p138_p2)  }
   0xb   : > { %400 = vmatpush1.bf16.msra.mxu1 (!%p138_p2), %v1375_v6  ;;  %v1391_v17 = vld [vmem:[%s1963_s1 + $0x204] ss:$8 sps:$4 sm:$0xff] (!%p138_p2)   ;;  %v1393_v18 = vld [vmem:[%s1963_s1 + $0x120] ss:$8 sps:$4 sm:$0xff] (!%p138_p2)   ;;  %v1395_v20 = vld [vmem:[%s1963_s1 + $0x134] ss:$8 sps:$4 sm:$0xff] (!%p138_p2)  }
   0xc   : > { %813 = vmatpush1.bf16.msra.mxu0 (!%p138_p2), %v1376_v7  ;;  %401 = vmatprep.subr.bf16.mxu1 (!%p138_p2), %v1377_v8  ;;  %v1394_v19 = vld [vmem:[%s1963_s1 + $0x200] ss:$8 sps:$4 sm:$0xff] (!%p138_p2)   ;;  %v1397_v21 = vld [vmem:[%s1963_s1 + $0x214] ss:$8 sps:$4 sm:$0xff] (!%p138_p2)   ;;  %v1399_v22 = vld [vmem:[%s1963_s1 + $0x130] ss:$8 sps:$4 sm:$0xff] (!%p138_p2)  }
   0xd   : > { %814 = vmatprep.subr.bf16.mxu0 %v1379_v9  ;;  %v1400_v23 = vld [vmem:[%s1963_s1 + $0x210] ss:$8 sps:$4 sm:$0xff]   ;;  %v1401_v24 = vld [vmem:[%s1963_s1 + $0x144] ss:$8 sps:$4 sm:$0xff]   ;;  %v1405_v26 = vld [vmem:[%s1963_s1 + $0x140] ss:$8 sps:$4 sm:$0xff]  }
   0xe   : > { %v1403_v25 = vld [vmem:[%s1963_s1 + $0x224] ss:$8 sps:$4 sm:$0xff]   ;;  %v1406_v27 = vld [vmem:[%s1963_s1 + $0x220] ss:$8 sps:$4 sm:$0xff]   ;;  %v1407_v28 = vld [vmem:[%s1963_s1 + $0x154] ss:$8 sps:$4 sm:$0xff]  }
   0xf   : > { %402 = vmatpush1.bf16.msra.mxu1 %v1381_v10  ;;  %v1409_v29 = vld [vmem:[%s1963_s1 + $0x234] ss:$8 sps:$4 sm:$0xff]   ;;  %v1411_v30 = vld [vmem:[%s1963_s1 + $0x150] ss:$8 sps:$4 sm:$0xff]   ;;  %v1413_v32 = vld [vmem:[%s1963_s1 + $0x164] ss:$8 sps:$4 sm:$0xff]  }
  0x10   : > { %815 = vmatpush1.bf16.msra.mxu0 %v1382_v11  ;;  %403 = vmatprep.subr.bf16.mxu1 %v1383_v12  ;;  %v1412_v31 = vld [vmem:[%s1963_s1 + $0x230] ss:$8 sps:$4 sm:$0xff]   ;;  %s1967_s13 = smov (!%p161_p3, %s1207_s13), 1  ;;  %v1415_v33 = vld [vmem:[%s1963_s1 + $0x244] ss:$8 sps:$4 sm:$0xff]   ;;  %vm393_vm0 = vcmask 785408  }
  0x11   : > { %816 = vmatprep.subr.bf16.mxu0 %v1385_v13  ;;  %v1417_v34 = vld [vmem:[%s1963_s1 + $0x160] ss:$8 sps:$4 sm:$0xff]   ;;  %v1419_v36 = vld [vmem:[%s1963_s1 + $0x174] ss:$8 sps:$4 sm:$0xff]   ;;  %s1341_s11 = sshll.u32 %s1967_s13, 4  ;;  %vm1142_vm1 = vcmask 1040384  }
  0x12   : > { %v1418_v35 = vld [vmem:[%s1963_s1 + $0x240] ss:$8 sps:$4 sm:$0xff]   ;;  %v1421_v37 = vld [vmem:[%s1963_s1 + $0x254] ss:$8 sps:$4 sm:$0xff]   ;;  %v1423_v38 = vld [vmem:[%s1963_s1 + $0x170] ss:$8 sps:$4 sm:$0xff]   ;;  %s1704_s20 = scalar_lea.vmem %s1962_s0, %s1341_s11  ;;  %s170_s30 = scalar_lea.vmem %s1965_s3, %s1341_s11 }
  0x13   : > { %404 = vmatpush1.bf16.msra.mxu1 %v1387_v14  ;;  %v1424_v39 = vld [vmem:[%s1963_s1 + $0x250] ss:$8 sps:$4 sm:$0xff]   ;;  %v1425_v40 = vld [vmem:[%s1963_s1 + $0x184] ss:$8 sps:$4 sm:$0xff]   ;;  %v1429_v42 = vld [vmem:[%s1963_s1 + $0x180] ss:$8 sps:$4 sm:$0xff]  }
  0x14   : > { %817 = vmatpush1.bf16.msra.mxu0 %v1388_v15  ;;  %405 = vmatprep.subr.bf16.mxu1 %v1389_v16  ;;  %v1427_v41 = vld [vmem:[%s1963_s1 + $0x264] ss:$8 sps:$4 sm:$0xff]   ;;  %v1430_v44 = vld [vmem:[%s1963_s1 + $0x260] ss:$8 sps:$4 sm:$0xff]   ;;  %v1431_v45 = vld [vmem:[%s1963_s1 + $0x194] ss:$8 sps:$4 sm:$0xff]  }
  0x15   : > { %818 = vmatprep.subr.bf16.mxu0 %v1391_v17  ;;  %v1719_v43 = vld [vmem:[%s1704_s20 + $0x4] ss:$8 sps:$4 sm:$0x1f]   ;;  %v1433_v48 = vld [vmem:[%s1963_s1 + $0x274] ss:$8 sps:$4 sm:$0xff]   ;;  %vm1145_vm3 = vcmask 1044484  }
  0x16   : > { %v246_v46 = vshrl.u32 %v1719_v43, 16  ;;  %v248_v47 = vshll.u32 %v1719_v43, 16  ;;  %v1435_v49 = vld [vmem:[%s1963_s1 + $0x190] ss:$8 sps:$4 sm:$0xff]   ;;  %v1437_v54 = vld [vmem:[%s1963_s1 + $0x1a4] ss:$8 sps:$4 sm:$0xff]  }
  0x17   : > { %406 = vmatpush1.bf16.msra.mxu1 %v1393_v18  ;;  %v1457_v51 = vld [vmem:[%s1704_s20 + $0x4] ss:$8 sps:$4 sm:$0x3e]   ;;  %v1436_v52 = vld [vmem:[%s1963_s1 + $0x270] ss:$8 sps:$4 sm:$0xff]  }
  0x18   : > { %819 = vmatpush1.bf16.msra.mxu0 %v1394_v19  ;;  %407 = vmatprep.subr.bf16.mxu1 %v1395_v20  ;;  %v250_v50 = vrot.slane %v248_v47, 1  ;;  %v1740_v53 = vld [vmem:[%s1704_s20] ss:$8 sps:$4 sm:$0x1f]   ;;  %v665_v56 = vrot.slane %v1457_v51, 1  ;;  %v894_v1 = vshrl.u32 %v1457_v51, 16 }
  0x19   : > { %820 = vmatprep.subr.bf16.mxu0 %v1397_v21  ;;  %v1439_v57 = vld [vmem:[%s1963_s1 + $0x284] ss:$8 sps:$4 sm:$0xff]   ;;  %v1441_v58 = vld [vmem:[%s1963_s1 + $0x1a0] ss:$8 sps:$4 sm:$0xff]   ;;  %v241_v60 = vshll.u32 %v1740_v53, 16  ;;  %v897_v2 = vshll.u32 %v1457_v51, 16 }
  0x1a   : > { %v251_v55 = vor.u32 %v250_v50, %v246_v46  ;;  %1306 = vmatprep.mubr.msk.bf16.mxu0 %vm393_vm0, %v665_v56  ;;  %v1442_v59 = vld [vmem:[%s1963_s1 + $0x280] ss:$8 sps:$4 sm:$0xff]   ;;  %v1443_v61 = vld [vmem:[%s1963_s1 + $0x1b4] ss:$8 sps:$4 sm:$0xff]   ;;  %v1447_v63 = vld [vmem:[%s1963_s1 + $0x1b0] ss:$8 sps:$4 sm:$0xff]  }
  0x1b   : > { %408 = vmatpush1.bf16.msra.mxu1 %v1399_v22  ;;  %v1445_v62 = vld [vmem:[%s1963_s1 + $0x294] ss:$8 sps:$4 sm:$0xff]   ;;  %v1448_v0 = vld [vmem:[%s1963_s1 + $0x290] ss:$8 sps:$4 sm:$0xff]   ;;  %v239_v4 = vshrl.u32 %v1740_v53, 16  ;;  %v243_v5 = vrot.slane %v241_v60, 1 }
  0x1c   : > { %821 = vmatpush1.bf16.msra.mxu0 %v1400_v23  ;;  %409 = vmatprep.subr.bf16.mxu1 %v1401_v24  ;;  %v1770_v3 = vld [vmem:[%s1704_s20] ss:$8 sps:$4 sm:$0x3e]   ;;  %v1454_v6 = vld [vmem:[%s1963_s1 + $0x4] ss:$8 sps:$4 sm:$0xff]   ;;  %v896_v8 = vrot.slane %v894_v1, 1 }
  0x1d   : > { %822 = vmatprep.subr.bf16.mxu0 %v1403_v25  ;;  %1246 = vmatprep.mubr.msk.bf16.mxu1 %vm393_vm0, %v251_v55  ;;  %v1460_v7 = vld [vmem:[%s1963_s1 + $0x2a4] ss:$8 sps:$4 sm:$0xff]   ;;  %v899_v9 = vrot.slane %v897_v2, 2  ;;  %v1452_v10 = vld [vmem:[%s1963_s1] ss:$8 sps:$4 sm:$0xff]   ;;  %v244_v12 = vor.u32 %v243_v5, %v239_v4  ;;  %v664_v13 = vrot.slane %v1770_v3, 1 }
  0x1e   : > { %v1458_v11 = vld [vmem:[%s1963_s1 + $0x2a0] ss:$8 sps:$4 sm:$0xff]   ;;  %v1463_v14 = vld [vmem:[%s1963_s1 + $0x14] ss:$8 sps:$4 sm:$0xff]   ;;  %v1461_v17 = vld [vmem:[%s1963_s1 + $0x10] ss:$8 sps:$4 sm:$0xff]  }
  0x1f   : > { %410 = vmatpush1.bf16.msra.mxu1 %v1405_v26  ;;  %v1466_v15 = vld [vmem:[%s1963_s1 + $0x2b4] ss:$8 sps:$4 sm:$0xff]   ;;  %v900_v16 = vor.u32 %v899_v9, %v896_v8  ;;  %v1464_v18 = vld [vmem:[%s1963_s1 + $0x2b0] ss:$8 sps:$4 sm:$0xff]   ;;  %v1469_v19 = vld [vmem:[%s1963_s1 + $0x24] ss:$8 sps:$4 sm:$0xff]   ;;  %v1094_v9 = vlaneseq }
  0x20   : > { %823 = vmatpush1.bf16.msra.mxu0 %v1406_v27  ;;  %411 = vmatprep.subr.bf16.mxu1 %v1407_v28  ;;  %v1472_v20 = vld [vmem:[%s1963_s1 + $0x2c4] ss:$8 sps:$4 sm:$0xff]   ;;  %v1467_v21 = vld [vmem:[%s1963_s1 + $0x20] ss:$8 sps:$4 sm:$0xff]   ;;  %v1475_v23 = vld [vmem:[%s1963_s1 + $0x34] ss:$8 sps:$4 sm:$0xff]  }
  0x21   : > { %824 = vmatprep.subr.bf16.mxu0 %v1409_v29  ;;  %v1470_v22 = vld [vmem:[%s1963_s1 + $0x2c0] ss:$8 sps:$4 sm:$0xff]   ;;  %v1478_v24 = vld [vmem:[%s1963_s1 + $0x2d4] ss:$8 sps:$4 sm:$0xff]   ;;  %v1473_v25 = vld [vmem:[%s1963_s1 + $0x30] ss:$8 sps:$4 sm:$0xff]  }
  0x22   : > { %v1476_v26 = vld [vmem:[%s1963_s1 + $0x2d0] ss:$8 sps:$4 sm:$0xff]   ;;  %v1481_v27 = vld [vmem:[%s1963_s1 + $0x44] ss:$8 sps:$4 sm:$0xff]   ;;  %v1479_v29 = vld [vmem:[%s1963_s1 + $0x40] ss:$8 sps:$4 sm:$0xff]  }
  0x23   : > { %412 = vmatpush1.bf16.msra.mxu1 %v1411_v30  ;;  %v1484_v28 = vld [vmem:[%s1963_s1 + $0x2e4] ss:$8 sps:$4 sm:$0xff]   ;;  %v1482_v30 = vld [vmem:[%s1963_s1 + $0x2e0] ss:$8 sps:$4 sm:$0xff]   ;;  %v1511_v47 = vld [vmem:[%s1963_s1 + $0x94] ss:$8 sps:$4 sm:$0xff]  }
  0x24   : > { %825 = vmatpush1.bf16.msra.mxu0 %v1412_v31  ;;  %413 = vmatprep.subr.bf16.mxu1 %v1413_v32  ;;  %v1487_v31 = vld [vmem:[%s1963_s1 + $0x54] ss:$8 sps:$4 sm:$0xff]   ;;  %v1506_v46 = vld [vmem:[%s1963_s1 + $0x320] ss:$8 sps:$4 sm:$0xff]   ;;  %v1512_v50 = vld [vmem:[%s1963_s1 + $0x330] ss:$8 sps:$4 sm:$0xff]  }
  0x25   : > { %826 = vmatprep.subr.bf16.mxu0 %v1415_v33  ;;  %v1490_v32 = vld [vmem:[%s1963_s1 + $0x2f4] ss:$8 sps:$4 sm:$0xff]   ;;  %v1485_v33 = vld [vmem:[%s1963_s1 + $0x50] ss:$8 sps:$4 sm:$0xff]   ;;  %v1517_v51 = vld [vmem:[%s1963_s1 + $0xa4] ss:$8 sps:$4 sm:$0xff]  }
  0x26   : > { %v1518_v55 = vld [vmem:[%s1963_s1 + $0x340] ss:$8 sps:$4 sm:$0xff]   ;;  %v1523_v56 = vld [vmem:[%s1963_s1 + $0xb4] ss:$8 sps:$4 sm:$0xff]   ;;  %v1529_v60 = vld [vmem:[%s1963_s1 + $0xc4] ss:$8 sps:$4 sm:$0xff]  }
  0x27   : > { %414 = vmatpush1.bf16.msra.mxu1 %v1417_v34  ;;  %v1488_v34 = vld [vmem:[%s1963_s1 + $0x2f0] ss:$8 sps:$4 sm:$0xff]   ;;  %v1530_v1 = vld [vmem:[%s1963_s1 + $0x360] ss:$8 sps:$4 sm:$0xff]   ;;  %v1535_v2 = vld [vmem:[%s1963_s1 + $0xd4] ss:$8 sps:$4 sm:$0xff]  }
  0x28   : > { %827 = vmatpush1.bf16.msra.mxu0 %v1418_v35  ;;  %415 = vmatprep.subr.bf16.mxu1 %v1419_v36  ;;  %v1493_v35 = vld [vmem:[%s1963_s1 + $0x64] ss:$8 sps:$4 sm:$0xff]   ;;  %vm1143_vm2 = vsmask.f32 256  ;;  %vm1146_vm4 = vsmask.f32 4352 }
  0x29   : > { %828 = vmatprep.subr.bf16.mxu0 %v1421_v37  ;;  %v1496_v36 = vld [vmem:[%s1963_s1 + $0x304] ss:$8 sps:$4 sm:$0xff]   ;;  %v1491_v37 = vld [vmem:[%s1963_s1 + $0x60] ss:$8 sps:$4 sm:$0xff]   ;;  %vm1144_vm5 = vmand %vm1142_vm1, %vm1143_vm2 }
  0x2a   : > { %vm1147_vm6 = vmand %vm1145_vm3, %vm1146_vm4 }
  0x2b   : > { %416 = vmatpush1.bf16.msra.mxu1 %v1423_v38  ;;  %v1494_v38 = vld [vmem:[%s1963_s1 + $0x300] ss:$8 sps:$4 sm:$0xff]   ;;  %vm1148_vm7 = vmor %vm1147_vm6, %vm1144_vm5 }
  0x2c   : > { %829 = vmatpush1.bf16.msra.mxu0 %v1424_v39  ;;  %417 = vmatprep.subr.bf16.mxu1 %v1425_v40  ;;  %v1499_v39 = vld [vmem:[%s1963_s1 + $0x74] ss:$8 sps:$4 sm:$0xff]  }
  0x2d   : > { %830 = vmatprep.subr.bf16.mxu0 %v1427_v41  ;;  %v1502_v40 = vld [vmem:[%s1963_s1 + $0x314] ss:$8 sps:$4 sm:$0xff]   ;;  %v1497_v41 = vld [vmem:[%s1963_s1 + $0x70] ss:$8 sps:$4 sm:$0xff]  }
  0x2f   : > { %418 = vmatpush1.bf16.msra.mxu1 %v1429_v42  ;;  %v1500_v42 = vld [vmem:[%s1963_s1 + $0x310] ss:$8 sps:$4 sm:$0xff]  }
  0x30   : > { %831 = vmatpush1.bf16.msra.mxu0 %v1430_v44  ;;  %419 = vmatprep.subr.bf16.mxu1 %v1431_v45  ;;  %v1508_v44 = vld [vmem:[%s1963_s1 + $0x324] ss:$8 sps:$4 sm:$0xff]   ;;  %v1503_v45 = vld [vmem:[%s1963_s1 + $0x80] ss:$8 sps:$4 sm:$0xff]  }
  0x31   : > { %832 = vmatprep.subr.bf16.mxu0 %v1433_v48  ;;  %v1514_v48 = vld [vmem:[%s1963_s1 + $0x334] ss:$8 sps:$4 sm:$0xff]  }
  0x33   : > { %420 = vmatpush1.bf16.msra.mxu1 %v1435_v49  ;;  %v1509_v49 = vld [vmem:[%s1963_s1 + $0x90] ss:$8 sps:$4 sm:$0xff]  }
  0x34   : > { %833 = vmatpush1.bf16.msra.mxu0 %v1436_v52  ;;  %421 = vmatprep.subr.bf16.mxu1 %v1437_v54  ;;  %v1520_v52 = vld [vmem:[%s1963_s1 + $0x344] ss:$8 sps:$4 sm:$0xff]   ;;  %v1515_v54 = vld [vmem:[%s1963_s1 + $0xa0] ss:$8 sps:$4 sm:$0xff]  }
  0x35   : > { %834 = vmatprep.subr.bf16.mxu0 %v1439_v57  ;;  %v1526_v57 = vld [vmem:[%s1963_s1 + $0x354] ss:$8 sps:$4 sm:$0xff]  }
  0x37   : > { %422 = vmatpush1.bf16.msra.mxu1 %v1441_v58  ;;  %v1521_v58 = vld [vmem:[%s1963_s1 + $0xb0] ss:$8 sps:$4 sm:$0xff]  }
  0x38   : > { %835 = vmatpush1.bf16.msra.mxu0 %v1442_v59  ;;  %423 = vmatprep.subr.bf16.mxu1 %v1443_v61  ;;  %v1524_v59 = vld [vmem:[%s1963_s1 + $0x350] ss:$8 sps:$4 sm:$0xff]   ;;  %v1532_v61 = vld [vmem:[%s1963_s1 + $0x364] ss:$8 sps:$4 sm:$0xff]  }
  0x39   : > { %836 = vmatprep.subr.bf16.mxu0 %v1445_v62  ;;  %v886_v62 = vshrl.u32 %v1770_v3, 16 }
  0x3b   : > { %424 = vmatpush1.bf16.msra.mxu1 %v1447_v63  ;;  %v889_v63 = vshll.u32 %v1770_v3, 16  ;;  %v1538_v3 = vld [vmem:[%s1963_s1 + $0x374] ss:$8 sps:$4 sm:$0xff]   ;;  %v888_v4 = vrot.slane %v886_v62, 1 }
  0x3c   : > { %837 = vmatpush1.bf16.msra.mxu0 %v1448_v0  ;;  %583 = vmatprep.subr.bf16.mxu1 %v1454_v6  ;;  %v1527_v0 = vld [vmem:[%s1963_s1 + $0xc0] ss:$8 sps:$4 sm:$0xff]   ;;  %v1533_v6 = vld [vmem:[%s1963_s1 + $0xd0] ss:$8 sps:$4 sm:$0xff]  }
  0x3d   : > { %1045 = vmatprep.subr.bf16.mxu0 %v1460_v7  ;;  %v891_v5 = vrot.slane %v889_v63, 2  ;;  %v1536_v7 = vld [vmem:[%s1963_s1 + $0x370] ss:$8 sps:$4 sm:$0xff]  }
  0x3e   : > { %430 = vmatmul.mubr.bf16.vlgmr.msra.gmra.mrb[0].mxu1 %v244_v12  ;;  %v1092_v12 = vld [vmem:[%s1964_s2] ss:$2 sm:$0x3] }
  0x3f   : > { %843 = vmatmul.mubr.bf16.vlgmr.msra.gmra.mrb[0].mxu0 %v664_v13  ;;  %584 = vmatpush1.bf16.msra.mxu1 %v1452_v10  ;;  %v892_v8 = vor.u32 %v891_v5, %v888_v4  ;;  %v1095_v10 = vshrl.u32 %v1094_v9, 7 }
  0x40   : > { %1046 = vmatpush1.bf16.msra.mxu0 %v1458_v11  ;;  %585 = vmatprep.subr.bf16.mxu1 %v1463_v14  ;;  %v1336_v14 = vld [vmem:[%s1964_s2 + $0x1] ss:$2 sm:$0x3] }
  0x41   : > { %1047 = vmatprep.subr.bf16.mxu0 %v1466_v15  ;;  %1275 = vmatprep.mubr.msk.bf16.mxu1 %vm393_vm0, %v1719_v43  ;;  %v1505_v43 = vld [vmem:[%s1963_s1 + $0x84] ss:$8 sps:$4 sm:$0xff]   ;;  %v1096_v11 = vsub.s32 0, %v1095_v10  ;;  %v1100_v13 = vsub.s32 1, %v1095_v10 }
  0x42   : > { %1335 = vmatprep.mubr.msk.bf16.mxu0 %vm393_vm0, %v900_v16 }
  0x43   : > { %586 = vmatpush1.bf16.msra.mxu1 %v1461_v17  ;;  %v1097_v15 = vrot.slane %v1092_v12, %v1096_v11 }
  0x44   : > { %1048 = vmatpush1.bf16.msra.mxu0 %v1464_v18  ;;  %587 = vmatprep.subr.bf16.mxu1 %v1469_v19  ;;  %v1101_v18 = vrot.slane %v1092_v12, %v1100_v13 }
  0x45   : > { %1049 = vmatprep.subr.bf16.mxu0 %v1472_v20  ;;  %v1114_v20 = vrot.slane %v1336_v14, %v1096_v11 }
  0x47   : > { %588 = vmatpush1.bf16.msra.mxu1 %v1467_v21 }
  0x48   : > { %1050 = vmatpush1.bf16.msra.mxu0 %v1470_v22  ;;  %589 = vmatprep.subr.bf16.mxu1 %v1475_v23  ;;  %v1118_v23 = vrot.slane %v1336_v14, %v1100_v13 }
  0x49   : > { %1051 = vmatprep.subr.bf16.mxu0 %v1478_v24 }
  0x4b   : > { %590 = vmatpush1.bf16.msra.mxu1 %v1473_v25 }
  0x4c   : > { %1052 = vmatpush1.bf16.msra.mxu0 %v1476_v26  ;;  %591 = vmatprep.subr.bf16.mxu1 %v1481_v27 }
  0x4d   : > { %1053 = vmatprep.subr.bf16.mxu0 %v1484_v28 }
  0x4f   : > { %592 = vmatpush1.bf16.msra.mxu1 %v1479_v29 }
  0x50   : > { %1054 = vmatpush1.bf16.msra.mxu0 %v1482_v30  ;;  %593 = vmatprep.subr.bf16.mxu1 %v1487_v31 }
  0x51   : > { %1055 = vmatprep.subr.bf16.mxu0 %v1490_v32 }
  0x53   : > { %594 = vmatpush1.bf16.msra.mxu1 %v1485_v33 }
  0x54   : > { %1056 = vmatpush1.bf16.msra.mxu0 %v1488_v34  ;;  %595 = vmatprep.subr.bf16.mxu1 %v1493_v35 }
  0x55   : > { %1057 = vmatprep.subr.bf16.mxu0 %v1496_v36 }
  0x57   : > { %596 = vmatpush1.bf16.msra.mxu1 %v1491_v37 }
  0x58   : > { %1058 = vmatpush1.bf16.msra.mxu0 %v1494_v38  ;;  %597 = vmatprep.subr.bf16.mxu1 %v1499_v39 }
  0x59   : > { %1059 = vmatprep.subr.bf16.mxu0 %v1502_v40 }
  0x5b   : > { %598 = vmatpush1.bf16.msra.mxu1 %v1497_v41 }
  0x5c   : > { %1060 = vmatpush1.bf16.msra.mxu0 %v1500_v42  ;;  %599 = vmatprep.subr.bf16.mxu1 %v1505_v43  ;;  %v1149_v43 = vld [vmem:[%s170_s30 + $0x8] sm:$0x11] }
  0x5d   : > { %1061 = vmatprep.subr.bf16.mxu0 %v1508_v44 }
  0x5f   : > { %600 = vmatpush1.bf16.msra.mxu1 %v1503_v45 }
  0x60   : > { %1062 = vmatpush1.bf16.msra.mxu0 %v1506_v46  ;;  %601 = vmatprep.subr.bf16.mxu1 %v1511_v47 }
  0x61   : > { %1063 = vmatprep.subr.bf16.mxu0 %v1514_v48 }
  0x63   : > { %602 = vmatpush1.bf16.msra.mxu1 %v1509_v49 }
  0x64   : > { %1064 = vmatpush1.bf16.msra.mxu0 %v1512_v50  ;;  %603 = vmatprep.subr.bf16.mxu1 %v1517_v51 }
  0x65   : > { %1065 = vmatprep.subr.bf16.mxu0 %v1520_v52 }
  0x67   : > { %604 = vmatpush1.bf16.msra.mxu1 %v1515_v54 }
  0x68   : > { %1066 = vmatpush1.bf16.msra.mxu0 %v1518_v55  ;;  %605 = vmatprep.subr.bf16.mxu1 %v1523_v56 }
  0x69   : > { %1067 = vmatprep.subr.bf16.mxu0 %v1526_v57 }
  0x6b   : > { %606 = vmatpush1.bf16.msra.mxu1 %v1521_v58 }
  0x6c   : > { %1068 = vmatpush1.bf16.msra.mxu0 %v1524_v59  ;;  %607 = vmatprep.subr.bf16.mxu1 %v1529_v60 }
  0x6d   : > { %1069 = vmatprep.subr.bf16.mxu0 %v1532_v61 }
  0x6f   : > { %608 = vmatpush1.bf16.msra.mxu1 %v1527_v0 }
  0x70   : > { %1070 = vmatpush1.bf16.msra.mxu0 %v1530_v1  ;;  %609 = vmatprep.subr.bf16.mxu1 %v1535_v2 }
  0x71   : > { %1071 = vmatprep.subr.bf16.mxu0 %v1538_v3 }
  0x73   : > { %610 = vmatpush1.bf16.msra.mxu1 %v1533_v6 }
  0x74   : > { %1072 = vmatpush1.bf16.msra.mxu0 %v1536_v7 }
  0x76   : > { %616 = vmatmul.mubr.bf16.vlgmr.msra.gmra.mrb[0].mxu1 %v1740_v53 }
  0x77   : > { %1078 = vmatmul.mubr.bf16.vlgmr.msra.gmra.mrb[0].mxu0 %v892_v8 }
 0x149   : > { %v617_v16 = vpop.f32.mrb[0].mxu1 }
 0x14a   : > { %v1079_v17 = vpop.f32.mrb[0].mxu0  ;;  %v619_v53 = vpop.f32.mrb[1].mxu1 }
 0x14b   : > { %v1345_v19 = vadd.f32 %v1079_v17, %v617_v16  ;;  %v1081_v21 = vpop.f32.mrb[1].mxu0  ;;  %v621_v24 = vpop.f32.mrb[2].mxu1 }
 0x14c   : > { %v1346_v22 = vadd.f32 %v1081_v21, %v619_v53  ;;  %v1083_v25 = vpop.f32.mrb[2].mxu0  ;;  %v623_v28 = vpop.f32.mrb[3].mxu1 }
 0x14d   : > { %v1104_v26 = vmul.f32 %v1345_v19, %v1097_v15  ;;  %v1347_v27 = vadd.f32 %v1083_v25, %v621_v24  ;;  %v1085_v29 = vpop.f32.mrb[3].mxu0 }
 0x14e   : > { %v1105_v30 = vmul.f32 %v1346_v22, %v1101_v18  ;;  %v1348_v31 = vadd.f32 %v1085_v29, %v623_v28 }
 0x14f   : > { %v1121_v32 = vadd.f32 %v1114_v20, %v1104_v26  ;;  %v1106_v33 = vmul.f32 %v1347_v27, %v1097_v15 }
 0x150   : > { %v1122_v34 = vadd.f32 %v1118_v23, %v1105_v30  ;;  %v1107_v35 = vmul.f32 %v1348_v31, %v1101_v18 }
 0x151   : > { %v1125_v36 = vmax.f32 %v1121_v32, 0.0  ;;  %v1123_v37 = vadd.f32 %v1114_v20, %v1106_v33 }
 0x152   : > { %v1126_v38 = vmax.f32 %v1122_v34, 0.0  ;;  %v1124_v39 = vadd.f32 %v1118_v23, %v1107_v35 }
 0x153   : > { %v1127_v40 = vmax.f32 %v1123_v37, 0.0 }
 0x154   : > { %v1343_v41 = vpack.c.bf16 %v1126_v38, %v1125_v36  ;;  %v1128_v42 = vmax.f32 %v1124_v39, 0.0 }
 0x156   : > { %1141 = vst [vmem:[%s170_s30] sm:$0xff] %v1343_v41  ;;  %v1344_v44 = vpack.c.bf16 %v1128_v42, %v1127_v40 }
 0x158   : > { %v1150_v45 = vsel %vm1148_vm7, %v1344_v44, %v1149_v43 }
 0x159   : > { %1151 = vst [vmem:[%s170_s30 + $0x8] sm:$0x11] %v1150_v45 }
 0x15a PF: > { %s13_s12 = sadd.s32 1, %s1545_s12  }
 0x15b   : > { %p10_p4 = scmp.ge.s32.totalorder %s13_s12, 4  }
 0x15d   :  { %12 = sbr.rel (!%p10_p4) target bundleno = 1 (0x1), region = 63 }

// kernel: _lambda_.5
= control target key start
LH: loop header
LB: loop body
LE: loop exit
PB: predicated region body
PF: predicated region fallthrough
CT: control target
= control target key end

     0   :  { %v106_v30 = vlaneseq  ;;  %v661_v34 = vmov 1966171168   ;;  %v662_v37 = vmov 0.0   ;;  %s824_s0 = inlined_call_operand.vmem [shape: bf16[2,512], index: 0, kind: input, shape index: {}]   ;;  %s825_s1 = inlined_call_operand.vmem [shape: bf16[512,64], index: 1, kind: input, shape index: {}]   ;;  %s826_s2 = inlined_call_operand.vmem [shape: f32[1,64], index: 2, kind: input, shape index: {}]   ;;  %s827_s3 = inlined_call_operand.vmem [shape: bf16[64,5], index: 3, kind: input, shape index: {}]   ;;  %s828_s4 = inlined_call_operand.vmem [shape: f32[1,5], index: 4, kind: input, shape index: {}]   ;;  %s829_s5 = inlined_call_operand.hbm [shape: f32[2,5], index: 5, kind: output, shape index: {}]  }
   0x1   :  { %v601_v0 = vld [vmem:[%s825_s1 + $0x40] sm:$0xff]   ;;  %v605_v4 = vld [vmem:[%s825_s1 + $0x48] sm:$0xff]   ;;  %v609_v8 = vld [vmem:[%s825_s1 + $0x50] sm:$0xff]   ;;  %v104_v35 = vunpack.c.l.s4 %v661_v34 }
   0x2   :  { %v602_v1 = vld [vmem:[%s825_s1 + $0xc0] sm:$0xff]   ;;  %536 = vmatprep.subr.bf16.mxu0 %v601_v0  ;;  %v606_v5 = vld [vmem:[%s825_s1 + $0xc8] sm:$0xff]   ;;  %v610_v9 = vld [vmem:[%s825_s1 + $0xd0] sm:$0xff]   ;;  %v107_v36 = vshrl.u32 %v106_v30, 7 }
   0x3   :  { %v603_v2 = vld [vmem:[%s825_s1] sm:$0xff]   ;;  %558 = vmatprep.subr.bf16.mxu1 %v602_v1  ;;  %v607_v6 = vld [vmem:[%s825_s1 + $0x8] sm:$0xff]   ;;  %v611_v10 = vld [vmem:[%s825_s1 + $0x10] sm:$0xff]   ;;  %v105_v39 = vunpack.c.0.s8 %v104_v35 }
   0x4   :  { %v604_v3 = vld [vmem:[%s825_s1 + $0x80] sm:$0xff]   ;;  %537 = vmatpush3.bf16.msra.mxu0 %v603_v2  ;;  %v608_v7 = vld [vmem:[%s825_s1 + $0x88] sm:$0xff]   ;;  %v612_v11 = vld [vmem:[%s825_s1 + $0x90] sm:$0xff]  }
   0x5   :  { %559 = vmatpush3.bf16.msra.mxu1 %v604_v3  ;;  %538 = vmatprep.subr.bf16.mxu0 %v605_v4  ;;  %v613_v12 = vld [vmem:[%s825_s1 + $0x58] sm:$0xff]   ;;  %v617_v16 = vld [vmem:[%s825_s1 + $0x60] sm:$0xff]   ;;  %v621_v20 = vld [vmem:[%s825_s1 + $0x68] sm:$0xff]  }
   0x6   :  { %560 = vmatprep.subr.bf16.mxu1 %v606_v5  ;;  %v614_v13 = vld [vmem:[%s825_s1 + $0xd8] sm:$0xff]   ;;  %v618_v17 = vld [vmem:[%s825_s1 + $0xe0] sm:$0xff]   ;;  %v622_v21 = vld [vmem:[%s825_s1 + $0xe8] sm:$0xff]  }
   0x7   :  { %v615_v14 = vld [vmem:[%s825_s1 + $0x18] sm:$0xff]   ;;  %v619_v18 = vld [vmem:[%s825_s1 + $0x20] sm:$0xff]   ;;  %v623_v22 = vld [vmem:[%s825_s1 + $0x28] sm:$0xff]  }
   0x8   :  { %539 = vmatpush3.bf16.msra.mxu0 %v607_v6  ;;  %v616_v15 = vld [vmem:[%s825_s1 + $0x98] sm:$0xff]   ;;  %v620_v19 = vld [vmem:[%s825_s1 + $0xa0] sm:$0xff]   ;;  %v624_v23 = vld [vmem:[%s825_s1 + $0xa8] sm:$0xff]  }
   0x9   :  { %561 = vmatpush3.bf16.msra.mxu1 %v608_v7  ;;  %540 = vmatprep.subr.bf16.mxu0 %v609_v8  ;;  %v625_v24 = vld [vmem:[%s825_s1 + $0x70] sm:$0xff]   ;;  %v629_v28 = vld [vmem:[%s825_s1 + $0x78] sm:$0xff]   ;;  %v497_v33 = vld.sshfl [vmem:[%s824_s0] sm:$0x33 pattern:$0x75316420] }
   0xa   :  { %562 = vmatprep.subr.bf16.mxu1 %v610_v9  ;;  %v626_v25 = vld [vmem:[%s825_s1 + $0xf0] sm:$0xff]   ;;  %v630_v29 = vld [vmem:[%s825_s1 + $0xf8] sm:$0xff]   ;;  %v102_v38 = vcombine.high %v497_v33, %v497_v33 }
   0xb   :  { %v627_v26 = vld [vmem:[%s825_s1 + $0x30] sm:$0xff]   ;;  %v631_v31 = vld [vmem:[%s825_s1 + $0x38] sm:$0xff]  }
   0xc   :  { %541 = vmatpush3.bf16.msra.mxu0 %v611_v10  ;;  %v628_v27 = vld [vmem:[%s825_s1 + $0xb0] sm:$0xff]   ;;  %v632_v32 = vld [vmem:[%s825_s1 + $0xb8] sm:$0xff]  }
   0xd   :  { %563 = vmatpush3.bf16.msra.mxu1 %v612_v11  ;;  %542 = vmatprep.subr.bf16.mxu0 %v613_v12 }
   0xe   :  { %564 = vmatprep.subr.bf16.mxu1 %v614_v13 }
  0x10   :  { %543 = vmatpush3.bf16.msra.mxu0 %v615_v14 }
  0x11   :  { %565 = vmatpush3.bf16.msra.mxu1 %v616_v15  ;;  %544 = vmatprep.subr.bf16.mxu0 %v617_v16 }
  0x12   :  { %566 = vmatprep.subr.bf16.mxu1 %v618_v17 }
  0x14   :  { %545 = vmatpush3.bf16.msra.mxu0 %v619_v18 }
  0x15   :  { %567 = vmatpush3.bf16.msra.mxu1 %v620_v19  ;;  %546 = vmatprep.subr.bf16.mxu0 %v621_v20 }
  0x16   :  { %568 = vmatprep.subr.bf16.mxu1 %v622_v21 }
  0x18   :  { %547 = vmatpush3.bf16.msra.mxu0 %v623_v22 }
  0x19   :  { %569 = vmatpush3.bf16.msra.mxu1 %v624_v23  ;;  %548 = vmatprep.subr.bf16.mxu0 %v625_v24 }
  0x1a   :  { %570 = vmatprep.subr.bf16.mxu1 %v626_v25 }
  0x1c   :  { %549 = vmatpush3.bf16.msra.mxu0 %v627_v26 }
  0x1d   :  { %571 = vmatpush3.bf16.msra.mxu1 %v628_v27  ;;  %550 = vmatprep.subr.bf16.mxu0 %v629_v28 }
  0x1e   :  { %572 = vmatprep.subr.bf16.mxu1 %v630_v29 }
  0x20   :  { %551 = vmatpush3.bf16.msra.mxu0 %v631_v31 }
  0x21   :  { %573 = vmatpush3.bf16.msra.mxu1 %v632_v32  ;;  %585 = vmatprep.subr.bf16.mxu0 %v662_v37 }
  0x22   :  { %10 = vsyncpa [#allocation3], 0  ;;  %v108_v40 = vsub.s32 %v105_v39, %v107_v36  ;;  %v633_v43 = vld [vmem:[%s827_s3] sm:$0xff]   ;;  %v634_v46 = vld [vmem:[%s827_s3 + $0x8] sm:$0xff]   ;;  %vm663_vm0 = vmmov 0   ;;  %vm436_vm1 = vcmask 523264  }
  0x23   :  { %v635_v47 = vld [vmem:[%s827_s3 + $0x10] sm:$0xff]   ;;  %v636_v48 = vld [vmem:[%s827_s3 + $0x18] sm:$0xff]   ;;  %v496_v50 = vld [vmem:[%s826_s2] ss:$0 sm:$0xff]  ;;  %s664_s2 = smov [#allocation2]   ;;  %vm480_vm2 = vcmask 33792  }
  0x24   :  { %v116_v41 = vrot.slane %v102_v38, %v108_v40  ;;  %v109_v42 = vrot.slane %v497_v33, %v108_v40  ;;  %v530_v0 = vld [vmem:[%s828_s4] ss:$0 sm:$0xff]  ;;  %s488_s18 = sshll.u32 %s664_s2, 4  ;;  %s489_s18 = int_to_ptr.vmem [resolvable:$true] %s488_s18 }
  0x25   :  { %s637_s19 = scalar_lea.vmem %s489_s18, 32  ;;  %p642_p1 = scmp.lt.s32.totalorder %s489_s18, %s489_s18 }
  0x26   :  { %347 = vmatprep.mubr.bf16.mxu0 %v116_v41  ;;  %v118_v44 = vcombine.high %v116_v41, %v116_v41  ;;  %v117_v45 = vcombine.high %v109_v42, %v109_v42  ;;  %p638_p0 = scmp.ne.s32.totalorder %s489_s18, %s637_s19  ;;  %p643_p2 = scmp.lt.s32.totalorder %s637_s19, %s637_s19 }
  0x27   :  { %348 = vmatmul.mubr.bf16.vlgmr.msra.gmra.mrb[0].mxu0 %v109_v42 }
  0x28   :  { %387 = vmatprep.mubr.bf16.mxu1 %v118_v44  ;;  %586 = vmatpush3.bf16.msra.mxu0 %v633_v43  ;;  %p644_p3 = por %p643_p2, %p642_p1 }
  0x29   :  { %388 = vmatmul.mubr.bf16.vlgmr.msra.gmra.mrb[0].mxu1 %v117_v45  ;;  %587 = vmatprep.subr.bf16.mxu0 %v662_v37 }
  0x2a   :  { %593 = vmatprep.mubr.msk.bf16.mxu0 %vm663_vm0, %v662_v37  ;;  %p645_p4 = pnand %p644_p3, %p638_p0 }
  0x2c   :  { %588 = vmatpush3.bf16.msra.mxu0 %v634_v46 }
  0x2d   :  { %589 = vmatprep.subr.bf16.mxu0 %v662_v37 }
  0x30   :  { %590 = vmatpush3.bf16.msra.mxu0 %v635_v47 }
  0x31   :  { %591 = vmatprep.subr.bf16.mxu0 %v662_v37 }
  0x34   :  { %592 = vmatpush3.bf16.msra.mxu0 %v636_v48 }
  0xfa   :  { %v552_v49 = vpop.f32.mrb[0].mxu0 }
  0xfb   :  { %v553_v51 = vpop.f32.mrb[1].mxu0 }
  0xfc   :  { %v574_v52 = vpop.f32.mrb[0].mxu1  ;;  %v554_v53 = vadd.f32 %v553_v51, %v552_v49  ;;  %v555_v54 = vpop.f32.mrb[2].mxu0 }
  0xfd   :  { %v575_v55 = vpop.f32.mrb[1].mxu1  ;;  %v556_v56 = vpop.f32.mrb[3].mxu0 }
  0xfe   :  { %v350_v57 = vadd.f32 %v554_v53, %v496_v50  ;;  %v576_v58 = vadd.f32 %v575_v55, %v574_v52  ;;  %v577_v59 = vpop.f32.mrb[2].mxu1 }
  0xff   :  { %v578_v60 = vpop.f32.mrb[3].mxu1 }
 0x100   :  { %v390_v61 = vadd.f32 %v576_v58, %v350_v57 }
 0x102   :  { %v395_v62 = vmax.f32 %v390_v61, 0.0 }
 0x104   :  { %v396_v63 = vpack.c.bf16 %v395_v62, %v395_v62 }
 0x106   :  { %594 = vmatmul.mubr.msk.bf16.vlgmr.msra.gmra.mrb[4].mxu0 %vm436_vm1, %v396_v63 }
 0x1d9   :  { %v474_v1 = vpop.f32.mrb[4].mxu0 }
 0x1da   :  { %v475_v2 = vadd.f32 %v530_v0, %v474_v1  ;;  %v595_v3 = vpop.f32.mrb[5].mxu0 }
 0x1db   :  { %v477_v4 = vpop.f32.mrb[6].mxu0 }
 0x1dc   :  { %v596_v5 = vpop.f32.mrb[7].mxu0  ;;  %481 = vst.msk [vmem:[#allocation2] sm:$0x3] %vm480_vm2, %v475_v2 }
 0x1dd   :  { %648 = shalt.err (!%p645_p4)
}
 0x1de   :  { %s649_s4 = scalar_lea.hbm %s829_s5, 32 }
 0x1df   :  { %p650_p5 = scmp.ne.s32.totalorder %s829_s5, %s649_s4  ;;  %p653_p6 = scmp.lt.u32.totalorder %s649_s4, %s829_s5 }
 0x1e1   :  { %p655_p7 = pnand %p653_p6, %p650_p5 }
 0x1e3   :  { %658 = shalt.err (!%p655_p7)
}
 0x1e4   :  { %491 = dma.vmem_to_hbm [thread:$0]  %s489_s18, 32, %s829_s5, [#allocation3]  }
 0x1e5   :  { %659 = dma.done.wait [#allocation3], 32  }
 0x1e6   :  { %660 = vsyncadd [#allocation3], 4294967264 }
 0x1e7   :  { %495 = vsyncpa [#allocation3], 1 }

</bundles_post_ra>
